<compile_context>
chip_gen: v7x
topology: tpu7x:2x2x1
jax: 0.10.0
libtpu: 0.0.40
codegen_flags: <defaults>
</compile_context>

<pallas_src>
import functools

import jax
import jax.numpy as jnp
import numpy as np
from jax import lax
from jax.experimental import pallas as pl
from jax.experimental.pallas import tpu as pltpu

DIM = 2
ORDER = 3
NUM_OF_CELLS = 2 ** (DIM * ORDER)  # 64


# ---------------------------------------------------------------------------
# Pallas kernel: in-kernel selector gather + LSTM recurrence + fused A/C heads
# ---------------------------------------------------------------------------
def sfcnet_kernel(idsf_ref, wih_ref, slab_ref, hc0_ref, out_ref, *,
                  H, OUT, VOCAB, OUT_W, off_hh, off_w1, off_w2, off_w3, off_b):
    """
    idsf_ref: (3, seq) int32 in SMEM   rows = [cell ids, avail flags, action flags]
    wih_ref : (vocab+2, 1, 4H) f32     rows 0:vocab = emb[id] @ W_ih^T + b (bias folded),
                                       row vocab = avail column of W_ih^T, row vocab+1 = action column
    slab_ref: (rows, 4H) f32           packed W_hh^T, fused head weights, head biases
    hc0_ref : (2, H) f32               rows = [h0, c0]
    out_ref : (1, OUT_W) f32           lanes [0:H)=h_T, [H:2H)=c_T, [2H:2H+OUT)=act,
                                       [2H+OUT]=critic, rest zero pad
    """
    seq = idsf_ref.shape[1]
    G = 4 * H

    # ---- one-time loads hoisted out of the recurrence ----
    w_hh = slab_ref[off_hh:off_hh + H, :]                 # (H, 4H)  loop-invariant MXU RHS
    avail_row = wih_ref[VOCAB]                            # (1, 4H)
    action_row = wih_ref[VOCAB + 1]                       # (1, 4H)

    h = hc0_ref[0:1, :]
    c = hc0_ref[1:2, :]

    # ---- statically unrolled recurrence (seq is small & static) ----
    for t in range(seq):
        idx = idsf_ref[0, t]
        av = idsf_ref[1, t].astype(jnp.float32)
        ac = idsf_ref[2, t].astype(jnp.float32)
        # Input-side gate pre-activation: embedding gather (bias pre-folded) + flag rows.
        gx = wih_ref[idx] + av * avail_row + ac * action_row           # (1, 4H)

        gates = gx + jnp.dot(h, w_hh, preferred_element_type=jnp.float32)

        # sigmoid = 1/(1+exp(-x)): exp + approx reciprocal land on the EUP slot,
        # one Newton step (VPU, free filler) restores full f32 accuracy.
        z = jnp.clip(gates, -30.0, 30.0)
        d = 1.0 + jnp.exp(-z)
        r = pl.reciprocal(d, approx=True)
        s = r * (2.0 - d * r)                                          # (1, 4H)

        i_g = s[:, 0:H]
        f_g = s[:, H:2 * H]
        o_g = s[:, 3 * H:4 * H]
        g_g = jnp.tanh(gates[:, 2 * H:3 * H])
        c = f_g * c + i_g * g_g
        h = o_g * jnp.tanh(c)

    # output = relu(output[:, -1, :]) == relu(h_T)
    out = jnp.maximum(h, 0.0)

    # ---- fused actor|critic heads: 3 matmuls, full 128-lane weights (unmasked results);
    #      only the K input of the next matmul is sliced (padding lanes are zero) ----
    w1 = slab_ref[off_w1:off_w1 + H, :]                   # [wa1 | wc1]       in lanes 0:H
    w2 = slab_ref[off_w2:off_w2 + H, :]                   # blkdiag(wa2, wc2) in lanes 0:H/2
    w3 = slab_ref[off_w3:off_w3 + H // 2, :]              # blkdiag(wa3, wc3) in lanes 0:OUT+1
    b1 = slab_ref[off_b + 0:off_b + 1, :]
    b2 = slab_ref[off_b + 1:off_b + 2, :]
    b3 = slab_ref[off_b + 2:off_b + 3, :]

    y1 = jnp.maximum(jnp.dot(out, w1, preferred_element_type=jnp.float32) + b1, 0.0)
    y2 = jnp.maximum(jnp.dot(y1[:, :H], w2, preferred_element_type=jnp.float32) + b2, 0.0)
    y3 = jnp.dot(y2[:, :H // 2], w3, preferred_element_type=jnp.float32) + b3   # (1, 4H)
    # lanes of y3: [0:OUT) = act, [OUT] = critic, rest already zero.

    # ---- single lane-dense output row, one unmasked full-width store ----
    tail = OUT_W - 2 * H
    if tail <= G:
        tail_vals = y3[:, :tail]
    else:
        tail_vals = jnp.concatenate([y3, jnp.zeros((1, tail - G), jnp.float32)], axis=1)
    out_ref[...] = jnp.concatenate([h, c, tail_vals], axis=1)


# ---------------------------------------------------------------------------
# Parameter packing (done once, outside jit)
# ---------------------------------------------------------------------------
def pack_params(params, vocab_size, embedding_size, hidden_size, output_size):
    E, H, OUT = embedding_size, hidden_size, output_size
    G = 4 * H
    assert H % 4 == 0
    assert G >= max(H, OUT + 1), "slab lane width must cover every fused weight"

    # Fold embedding and the combined LSTM bias into per-id gather rows:
    #   gates_x[t] = emb[id_t] @ W_ih^T[:E] + b  +  avail_t * W_ih^T[E]  +  action_t * W_ih^T[E+1]
    w_ih_T = params["w_ih_T"]                                        # (E+2, 4H)
    id_rows = params["emb"] @ w_ih_T[:E, :] + params["b_lstm"]       # (vocab, 4H)
    flag_rows = w_ih_T[E:E + 2, :]                                   # (2, 4H)
    wih_gather = jnp.concatenate([id_rows, flag_rows], axis=0)
    wih_gather = wih_gather.reshape(vocab_size + 2, 1, G)            # leading-dim gather layout

    # Fused actor|critic head weights (zero padding beyond the used lanes is intentional).
    w1 = jnp.concatenate([params["wa1"], params["wc1"]], axis=1)     # (H, H)
    b1 = jnp.concatenate([params["ba1"], params["bc1"]], axis=1)     # (1, H)
    w2 = jnp.zeros((H, H // 2), jnp.float32)                         # block-diagonal
    w2 = w2.at[:H // 2, :H // 4].set(params["wa2"]).at[H // 2:, H // 4:].set(params["wc2"])
    b2 = jnp.concatenate([params["ba2"], params["bc2"]], axis=1)     # (1, H/2)
    w3 = jnp.zeros((H // 2, OUT + 1), jnp.float32)                   # block-diagonal
    w3 = w3.at[:H // 4, :OUT].set(params["wa3"]).at[H // 4:, OUT:].set(params["wc3"])
    b3 = jnp.concatenate([params["ba3"], params["bc3"]], axis=1)     # (1, OUT+1)

    def _align(n, a=8):
        return (n + a - 1) // a * a

    off_hh = 0
    off_w1 = _align(off_hh + H)
    off_w2 = _align(off_w1 + H)
    off_w3 = _align(off_w2 + H)
    off_b = _align(off_w3 + H // 2)
    rows = _align(off_b + 3)

    slab = jnp.zeros((rows, G), jnp.float32)

    def put(s, off, m):
        r, c = m.shape
        return s.at[off:off + r, :c].set(m)

    slab = put(slab, off_hh, params["w_hh_T"])
    slab = put(slab, off_w1, w1)
    slab = put(slab, off_w2, w2)
    slab = put(slab, off_w3, w3)
    slab = put(slab, off_b + 0, b1)
    slab = put(slab, off_b + 1, b2)
    slab = put(slab, off_b + 2, b3)

    offs = dict(off_hh=off_hh, off_w1=off_w1, off_w2=off_w2, off_w3=off_w3, off_b=off_b)
    return wih_gather, slab, offs


# ---------------------------------------------------------------------------
# Forward wrapper (one jit: tiny SMEM table + pallas_call + output split)
# ---------------------------------------------------------------------------
@functools.partial(
    jax.jit,
    static_argnames=("vocab_size", "hidden_size", "output_size",
                     "off_hh", "off_w1", "off_w2", "off_w3", "off_b"))
def _forward_impl(wih, slab, input_ids, avail_id, action_ids, h0, c0, *,
                  vocab_size, hidden_size, output_size,
                  off_hh, off_w1, off_w2, off_w3, off_b):
    H, OUT = hidden_size, output_size
    seq = input_ids.shape[0]

    # Tiny SMEM selector table: row0 = cell ids, row1 = avail flags, row2 = action flags.
    avail_flag = jnp.isin(input_ids, avail_id).astype(jnp.int32)
    if action_ids.shape[0] > 0:
        action_flag = jnp.isin(input_ids, action_ids).astype(jnp.int32)
    else:
        action_flag = jnp.zeros((seq,), jnp.int32)
    idsf = jnp.stack([input_ids.astype(jnp.int32), avail_flag, action_flag], axis=0)

    hc0 = jnp.concatenate([h0, c0], axis=0)                 # (2, H)

    out_width = 2 * H + OUT + 1
    OUT_W = (out_width + 127) // 128 * 128                  # lane-dense output row

    kernel = functools.partial(
        sfcnet_kernel, H=H, OUT=OUT, VOCAB=vocab_size, OUT_W=OUT_W,
        off_hh=off_hh, off_w1=off_w1, off_w2=off_w2, off_w3=off_w3, off_b=off_b)

    smem = pl.BlockSpec(memory_space=pltpu.MemorySpace.SMEM)
    vmem = pl.BlockSpec(memory_space=pltpu.MemorySpace.VMEM)

    cost = pl.CostEstimate(
        flops=2 * seq * H * 4 * H + 2 * (H * 4 * H + H * 4 * H + (H // 2) * 4 * H),
        transcendentals=seq * (4 * H + 4 * H + 2 * H),        # exp + recip + 2 tanh per step
        bytes_accessed=(wih.size + slab.size + hc0.size + idsf.size + OUT_W) * 4)

    out_row = pl.pallas_call(
        kernel,
        out_shape=jax.ShapeDtypeStruct((1, OUT_W), jnp.float32),
        in_specs=[smem, vmem, vmem, vmem],
        out_specs=vmem,
        cost_estimate=cost,
    )(idsf, wih, slab, hc0)

    h_last = out_row[:, 0:H]
    c_last = out_row[:, H:2 * H]
    act = out_row[:, 2 * H:2 * H + OUT]
    critic = out_row[:, 2 * H + OUT:2 * H + OUT + 1]
    # Match PyTorch LSTM hidden/cell shapes: (num_layers=1, batch=1, H)
    return critic, act, (h_last.reshape(1, 1, H), c_last.reshape(1, 1, H))


def sfcnet_pallas_forward(wih, slab, offs, input_ids, avail_id, action_ids, h0, c0, *,
                          vocab_size, hidden_size, output_size):
    return _forward_impl(wih, slab, input_ids, avail_id, action_ids, h0, c0,
                         vocab_size=vocab_size, hidden_size=hidden_size,
                         output_size=output_size, **offs)


# ---------------------------------------------------------------------------
# Pure-JAX reference with the ORIGINAL (unfused) structure, for correctness
# ---------------------------------------------------------------------------
def sfcnet_reference(params, input_ids, avail_id, action_ids, h0, c0):
    H = h0.shape[1]
    embeds = jnp.take(params["emb"], input_ids, axis=0)
    avail_binary = jnp.isin(input_ids, avail_id).astype(jnp.float32)[:, None]
    if action_ids.shape[0] > 0:
        action_binary = jnp.isin(input_ids, action_ids).astype(jnp.float32)[:, None]
    else:
        action_binary = jnp.zeros((input_ids.shape[0], 1), jnp.float32)
    x_seq = jnp.concatenate([embeds, avail_binary, action_binary], axis=1)

    gates_x = x_seq @ params["w_ih_T"] + params["b_lstm"]

    def step(carry, gx):
        h, c = carry
        gates = gx[None, :] + h @ params["w_hh_T"]
        i = jax.nn.sigmoid(gates[:, 0 * H:1 * H])
        f = jax.nn.sigmoid(gates[:, 1 * H:2 * H])
        g = jnp.tanh(gates[:, 2 * H:3 * H])
        o = jax.nn.sigmoid(gates[:, 3 * H:4 * H])
        c_new = f * c + i * g
        h_new = o * jnp.tanh(c_new)
        return (h_new, c_new), None

    (h_last, c_last), _ = lax.scan(step, (h0, c0), gates_x)
    out = jnp.maximum(h_last, 0.0)
    a1 = jnp.maximum(out @ params["wa1"] + params["ba1"], 0.0)
    a2 = jnp.maximum(a1 @ params["wa2"] + params["ba2"], 0.0)
    act = a2 @ params["wa3"] + params["ba3"]
    c1 = jnp.maximum(out @ params["wc1"] + params["bc1"], 0.0)
    c2 = jnp.maximum(c1 @ params["wc2"] + params["bc2"], 0.0)
    critic = c2 @ params["wc3"] + params["bc3"]
    return critic, act, (h_last, c_last)


# ---------------------------------------------------------------------------
# Deterministic parameter initialization (shapes from SFCNet.__init__)
# ---------------------------------------------------------------------------
def init_params(key, vocab_size, embedding_size, hidden_size, output_size):
    E, H = embedding_size, hidden_size
    in_lstm = E + 2
    keys = jax.random.split(key, 16)
    u = lambda k, shape, s: jax.random.uniform(k, shape, jnp.float32, -s, s)
    k_lstm = 1.0 / np.sqrt(H)
    return {
        "emb": jax.random.normal(keys[0], (vocab_size, E), jnp.float32),
        # LSTM weights stored transposed, gate order [i, f, g, o]
        "w_ih_T": u(keys[1], (in_lstm, 4 * H), k_lstm),
        "w_hh_T": u(keys[2], (H, 4 * H), k_lstm),
        "b_lstm": u(keys[3], (1, 4 * H), k_lstm),          # b_ih + b_hh combined
        "wa1": u(keys[4], (H, H // 2), 1.0 / np.sqrt(H)),
        "ba1": u(keys[5], (1, H // 2), 1.0 / np.sqrt(H)),
        "wa2": u(keys[6], (H // 2, H // 4), 1.0 / np.sqrt(H // 2)),
        "ba2": u(keys[7], (1, H // 4), 1.0 / np.sqrt(H // 2)),
        "wa3": u(keys[8], (H // 4, output_size), 1.0 / np.sqrt(H // 4)),
        "ba3": u(keys[9], (1, output_size), 1.0 / np.sqrt(H // 4)),
        "wc1": u(keys[10], (H, H // 2), 1.0 / np.sqrt(H)),
        "bc1": u(keys[11], (1, H // 2), 1.0 / np.sqrt(H)),
        "wc2": u(keys[12], (H // 2, H // 4), 1.0 / np.sqrt(H // 2)),
        "bc2": u(keys[13], (1, H // 4), 1.0 / np.sqrt(H // 2)),
        "wc3": u(keys[14], (H // 4, 1), 1.0 / np.sqrt(H // 4)),
        "bc3": u(keys[15], (1, 1), 1.0 / np.sqrt(H // 4)),
    }


if __name__ == "__main__":
    # Small, module-consistent shapes
    vocab_size = NUM_OF_CELLS       # 64
    embedding_size = 16
    hidden_size = 32
    output_size = 8
    seq = 8                         # length of `input` (subset of the 64 cells)

    key = jax.random.PRNGKey(0)
    params = init_params(key, vocab_size, embedding_size, hidden_size, output_size)
    wih, slab, offs = pack_params(params, vocab_size, embedding_size, hidden_size, output_size)

    # forward(input, avail_id, his, action)
    input_ids = jnp.arange(seq, dtype=jnp.int32)          # cell ids
    avail_id = jnp.array([1, 3, 5], dtype=jnp.int32)      # available cells
    action = jnp.array([2], dtype=jnp.int32)              # taken actions
    h0 = jnp.zeros((1, hidden_size), jnp.float32)         # self.his
    c0 = jnp.zeros((1, hidden_size), jnp.float32)

    critic, act, (h_out, c_out) = sfcnet_pallas_forward(
        wih, slab, offs, input_ids, avail_id, action, h0, c0,
        vocab_size=vocab_size, hidden_size=hidden_size, output_size=output_size)
    jax.block_until_ready((critic, act, h_out, c_out))

    # Correctness check vs pure-JAX reference (original unfused math).
    # Slightly looser than 1e-4: the EUP approx-reciprocal sigmoid (with one Newton step)
    # plus the fused/refolded weights introduce small reassociation differences.
    critic_r, act_r, (h_r, c_r) = sfcnet_reference(params, input_ids, avail_id, action, h0, c0)
    np.testing.assert_allclose(np.asarray(critic), np.asarray(critic_r), atol=2e-4, rtol=2e-4)
    np.testing.assert_allclose(np.asarray(act), np.asarray(act_r), atol=2e-4, rtol=2e-4)
    np.testing.assert_allclose(np.asarray(h_out)[0], np.asarray(h_r), atol=2e-4, rtol=2e-4)
    np.testing.assert_allclose(np.asarray(c_out)[0], np.asarray(c_r), atol=2e-4, rtol=2e-4)

    assert critic.shape == (1, 1)
    assert act.shape == (1, output_size)
    assert h_out.shape == (1, 1, hidden_size) and c_out.shape == (1, 1, hidden_size)

    # TODO(synk): training-side pieces (Adam update, conjugate_loss/GAE) are host-side
    # training logic, not kernels.
    print("KERNEL_OK")
</pallas_src>

<mosaic_0001>
module attributes {stable_mosaic.version = 11 : i64} {
  func.func @sfcnet_kernel(%arg0: memref<3x8xi32, #tpu.memory_space<smem>>, %arg1: memref<66x1x128xf32, #tpu.memory_space<vmem>>, %arg2: memref<120x128xf32, #tpu.memory_space<vmem>>, %arg3: memref<2x32xf32, #tpu.memory_space<vmem>>, %arg4: memref<1x128xf32, #tpu.memory_space<vmem>>) attributes {dimension_semantics = [], scalar_prefetch = 0 : i64, scratch_operands = 0 : i64, tpu.core_type = #tpu.core_type<tc>} {
    %c0 = arith.constant 0 : index
    %c0_0 = arith.constant 0 : index
    %0 = vector.load %arg2[%c0, %c0_0] : memref<120x128xf32, #tpu.memory_space<vmem>>, vector<32x128xf32>
    %c64 = arith.constant 64 : index
    %c0_1 = arith.constant 0 : index
    %c0_2 = arith.constant 0 : index
    %1 = vector.load %arg1[%c64, %c0_1, %c0_2] : memref<66x1x128xf32, #tpu.memory_space<vmem>>, vector<1x1x128xf32>
    %2 = vector.shape_cast %1 : vector<1x1x128xf32> to vector<1x128xf32>
    %c65 = arith.constant 65 : index
    %c0_3 = arith.constant 0 : index
    %c0_4 = arith.constant 0 : index
    %3 = vector.load %arg1[%c65, %c0_3, %c0_4] : memref<66x1x128xf32, #tpu.memory_space<vmem>>, vector<1x1x128xf32>
    %4 = vector.shape_cast %3 : vector<1x1x128xf32> to vector<1x128xf32>
    %c0_5 = arith.constant 0 : index
    %c0_6 = arith.constant 0 : index
    %5 = vector.load %arg3[%c0_5, %c0_6] : memref<2x32xf32, #tpu.memory_space<vmem>>, vector<1x32xf32>
    %c1 = arith.constant 1 : index
    %c0_7 = arith.constant 0 : index
    %6 = vector.load %arg3[%c1, %c0_7] : memref<2x32xf32, #tpu.memory_space<vmem>>, vector<1x32xf32>
    %c0_8 = arith.constant 0 : index
    %c0_9 = arith.constant 0 : index
    %7 = memref.load %arg0[%c0_8, %c0_9] : memref<3x8xi32, #tpu.memory_space<smem>>
    %c1_10 = arith.constant 1 : index
    %c0_11 = arith.constant 0 : index
    %8 = memref.load %arg0[%c1_10, %c0_11] : memref<3x8xi32, #tpu.memory_space<smem>>
    %9 = arith.sitofp %8 : i32 to f32
    %c2 = arith.constant 2 : index
    %c0_12 = arith.constant 0 : index
    %10 = memref.load %arg0[%c2, %c0_12] : memref<3x8xi32, #tpu.memory_space<smem>>
    %11 = arith.sitofp %10 : i32 to f32
    %12 = arith.index_cast %7 : i32 to index
    %c0_13 = arith.constant 0 : index
    %c0_14 = arith.constant 0 : index
    %13 = vector.load %arg1[%12, %c0_13, %c0_14] : memref<66x1x128xf32, #tpu.memory_space<vmem>>, vector<1x1x128xf32>
    %14 = vector.shape_cast %13 : vector<1x1x128xf32> to vector<1x128xf32>
    %15 = vector.broadcast %9 : f32 to vector<1x128xf32>
    %16 = arith.mulf %15, %2 : vector<1x128xf32>
    %17 = arith.addf %14, %16 : vector<1x128xf32>
    %18 = vector.broadcast %11 : f32 to vector<1x128xf32>
    %19 = arith.mulf %18, %4 : vector<1x128xf32>
    %20 = arith.addf %17, %19 : vector<1x128xf32>
    %cst = arith.constant dense<0.000000e+00> : vector<1x128xf32>
    %21 = tpu.matmul %5, %0, %cst {dimension_numbers = #tpu.dot_dimension_numbers<[1], [0], [0], [1], [0, 0, 1, 1], [], []>} : vector<1x32xf32>, vector<32x128xf32>, vector<1x128xf32> -> vector<1x128xf32>
    %22 = arith.addf %20, %21 : vector<1x128xf32>
    %cst_15 = arith.constant -3.000000e+01 : f32
    %cst_16 = arith.constant 3.000000e+01 : f32
    %23 = vector.broadcast %cst_15 : f32 to vector<1x128xf32>
    %24 = arith.maximumf %23, %22 : vector<1x128xf32>
    %25 = vector.broadcast %cst_16 : f32 to vector<1x128xf32>
    %26 = arith.minimumf %25, %24 : vector<1x128xf32>
    %cst_17 = arith.constant 0.000000e+00 : f32
    %27 = vector.broadcast %cst_17 : f32 to vector<1x128xf32>
    %28 = arith.subf %27, %26 : vector<1x128xf32>
    %29 = math.exp %28 : vector<1x128xf32>
    %cst_18 = arith.constant 1.000000e+00 : f32
    %30 = vector.broadcast %cst_18 : f32 to vector<1x128xf32>
    %31 = arith.addf %30, %29 : vector<1x128xf32>
    %32 = tpu.reciprocal %31 {approx = true} : vector<1x128xf32> -> vector<1x128xf32>
    %33 = arith.mulf %31, %32 : vector<1x128xf32>
    %cst_19 = arith.constant 2.000000e+00 : f32
    %34 = vector.broadcast %cst_19 : f32 to vector<1x128xf32>
    %35 = arith.subf %34, %33 : vector<1x128xf32>
    %36 = arith.mulf %32, %35 : vector<1x128xf32>
    %37 = vector.extract_strided_slice %36 {offsets = [0, 0], sizes = [1, 32], strides = [1, 1]} : vector<1x128xf32> to vector<1x32xf32>
    %38 = vector.extract_strided_slice %36 {offsets = [0, 32], sizes = [1, 32], strides = [1, 1]} : vector<1x128xf32> to vector<1x32xf32>
    %39 = vector.extract_strided_slice %36 {offsets = [0, 96], sizes = [1, 32], strides = [1, 1]} : vector<1x128xf32> to vector<1x32xf32>
    %40 = vector.extract_strided_slice %22 {offsets = [0, 64], sizes = [1, 32], strides = [1, 1]} : vector<1x128xf32> to vector<1x32xf32>
    %41 = math.tanh %40 : vector<1x32xf32>
    %42 = arith.mulf %38, %6 : vector<1x32xf32>
    %43 = arith.mulf %37, %41 : vector<1x32xf32>
    %44 = arith.addf %42, %43 : vector<1x32xf32>
    %45 = math.tanh %44 : vector<1x32xf32>
    %46 = arith.mulf %39, %45 : vector<1x32xf32>
    %c0_20 = arith.constant 0 : index
    %c1_21 = arith.constant 1 : index
    %47 = memref.load %arg0[%c0_20, %c1_21] : memref<3x8xi32, #tpu.memory_space<smem>>
    %c1_22 = arith.constant 1 : index
    %c1_23 = arith.constant 1 : index
    %48 = memref.load %arg0[%c1_22, %c1_23] : memref<3x8xi32, #tpu.memory_space<smem>>
    %49 = arith.sitofp %48 : i32 to f32
    %c2_24 = arith.constant 2 : index
    %c1_25 = arith.constant 1 : index
    %50 = memref.load %arg0[%c2_24, %c1_25] : memref<3x8xi32, #tpu.memory_space<smem>>
    %51 = arith.sitofp %50 : i32 to f32
    %52 = arith.index_cast %47 : i32 to index
    %c0_26 = arith.constant 0 : index
    %c0_27 = arith.constant 0 : index
    %53 = vector.load %arg1[%52, %c0_26, %c0_27] : memref<66x1x128xf32, #tpu.memory_space<vmem>>, vector<1x1x128xf32>
    %54 = vector.shape_cast %53 : vector<1x1x128xf32> to vector<1x128xf32>
    %55 = vector.broadcast %49 : f32 to vector<1x128xf32>
    %56 = arith.mulf %55, %2 : vector<1x128xf32>
    %57 = arith.addf %54, %56 : vector<1x128xf32>
    %58 = vector.broadcast %51 : f32 to vector<1x128xf32>
    %59 = arith.mulf %58, %4 : vector<1x128xf32>
    %60 = arith.addf %57, %59 : vector<1x128xf32>
    %cst_28 = arith.constant dense<0.000000e+00> : vector<1x128xf32>
    %61 = tpu.matmul %46, %0, %cst_28 {dimension_numbers = #tpu.dot_dimension_numbers<[1], [0], [0], [1], [0, 0, 1, 1], [], []>} : vector<1x32xf32>, vector<32x128xf32>, vector<1x128xf32> -> vector<1x128xf32>
    %62 = arith.addf %60, %61 : vector<1x128xf32>
    %cst_29 = arith.constant -3.000000e+01 : f32
    %cst_30 = arith.constant 3.000000e+01 : f32
    %63 = vector.broadcast %cst_29 : f32 to vector<1x128xf32>
    %64 = arith.maximumf %63, %62 : vector<1x128xf32>
    %65 = vector.broadcast %cst_30 : f32 to vector<1x128xf32>
    %66 = arith.minimumf %65, %64 : vector<1x128xf32>
    %cst_31 = arith.constant 0.000000e+00 : f32
    %67 = vector.broadcast %cst_31 : f32 to vector<1x128xf32>
    %68 = arith.subf %67, %66 : vector<1x128xf32>
    %69 = math.exp %68 : vector<1x128xf32>
    %cst_32 = arith.constant 1.000000e+00 : f32
    %70 = vector.broadcast %cst_32 : f32 to vector<1x128xf32>
    %71 = arith.addf %70, %69 : vector<1x128xf32>
    %72 = tpu.reciprocal %71 {approx = true} : vector<1x128xf32> -> vector<1x128xf32>
    %73 = arith.mulf %71, %72 : vector<1x128xf32>
    %cst_33 = arith.constant 2.000000e+00 : f32
    %74 = vector.broadcast %cst_33 : f32 to vector<1x128xf32>
    %75 = arith.subf %74, %73 : vector<1x128xf32>
    %76 = arith.mulf %72, %75 : vector<1x128xf32>
    %77 = vector.extract_strided_slice %76 {offsets = [0, 0], sizes = [1, 32], strides = [1, 1]} : vector<1x128xf32> to vector<1x32xf32>
    %78 = vector.extract_strided_slice %76 {offsets = [0, 32], sizes = [1, 32], strides = [1, 1]} : vector<1x128xf32> to vector<1x32xf32>
    %79 = vector.extract_strided_slice %76 {offsets = [0, 96], sizes = [1, 32], strides = [1, 1]} : vector<1x128xf32> to vector<1x32xf32>
    %80 = vector.extract_strided_slice %62 {offsets = [0, 64], sizes = [1, 32], strides = [1, 1]} : vector<1x128xf32> to vector<1x32xf32>
    %81 = math.tanh %80 : vector<1x32xf32>
    %82 = arith.mulf %78, %44 : vector<1x32xf32>
    %83 = arith.mulf %77, %81 : vector<1x32xf32>
    %84 = arith.addf %82, %83 : vector<1x32xf32>
    %85 = math.tanh %84 : vector<1x32xf32>
    %86 = arith.mulf %79, %85 : vector<1x32xf32>
    %c0_34 = arith.constant 0 : index
    %c2_35 = arith.constant 2 : index
    %87 = memref.load %arg0[%c0_34, %c2_35] : memref<3x8xi32, #tpu.memory_space<smem>>
    %c1_36 = arith.constant 1 : index
    %c2_37 = arith.constant 2 : index
    %88 = memref.load %arg0[%c1_36, %c2_37] : memref<3x8xi32, #tpu.memory_space<smem>>
    %89 = arith.sitofp %88 : i32 to f32
    %c2_38 = arith.constant 2 : index
    %c2_39 = arith.constant 2 : index
    %90 = memref.load %arg0[%c2_38, %c2_39] : memref<3x8xi32, #tpu.memory_space<smem>>
    %91 = arith.sitofp %90 : i32 to f32
    %92 = arith.index_cast %87 : i32 to index
    %c0_40 = arith.constant 0 : index
    %c0_41 = arith.constant 0 : index
    %93 = vector.load %arg1[%92, %c0_40, %c0_41] : memref<66x1x128xf32, #tpu.memory_space<vmem>>, vector<1x1x128xf32>
    %94 = vector.shape_cast %93 : vector<1x1x128xf32> to vector<1x128xf32>
    %95 = vector.broadcast %89 : f32 to vector<1x128xf32>
    %96 = arith.mulf %95, %2 : vector<1x128xf32>
    %97 = arith.addf %94, %96 : vector<1x128xf32>
    %98 = vector.broadcast %91 : f32 to vector<1x128xf32>
    %99 = arith.mulf %98, %4 : vector<1x128xf32>
    %100 = arith.addf %97, %99 : vector<1x128xf32>
    %cst_42 = arith.constant dense<0.000000e+00> : vector<1x128xf32>
    %101 = tpu.matmul %86, %0, %cst_42 {dimension_numbers = #tpu.dot_dimension_numbers<[1], [0], [0], [1], [0, 0, 1, 1], [], []>} : vector<1x32xf32>, vector<32x128xf32>, vector<1x128xf32> -> vector<1x128xf32>
    %102 = arith.addf %100, %101 : vector<1x128xf32>
    %cst_43 = arith.constant -3.000000e+01 : f32
    %cst_44 = arith.constant 3.000000e+01 : f32
    %103 = vector.broadcast %cst_43 : f32 to vector<1x128xf32>
    %104 = arith.maximumf %103, %102 : vector<1x128xf32>
    %105 = vector.broadcast %cst_44 : f32 to vector<1x128xf32>
    %106 = arith.minimumf %105, %104 : vector<1x128xf32>
    %cst_45 = arith.constant 0.000000e+00 : f32
    %107 = vector.broadcast %cst_45 : f32 to vector<1x128xf32>
    %108 = arith.subf %107, %106 : vector<1x128xf32>
    %109 = math.exp %108 : vector<1x128xf32>
    %cst_46 = arith.constant 1.000000e+00 : f32
    %110 = vector.broadcast %cst_46 : f32 to vector<1x128xf32>
    %111 = arith.addf %110, %109 : vector<1x128xf32>
    %112 = tpu.reciprocal %111 {approx = true} : vector<1x128xf32> -> vector<1x128xf32>
    %113 = arith.mulf %111, %112 : vector<1x128xf32>
    %cst_47 = arith.constant 2.000000e+00 : f32
    %114 = vector.broadcast %cst_47 : f32 to vector<1x128xf32>
    %115 = arith.subf %114, %113 : vector<1x128xf32>
    %116 = arith.mulf %112, %115 : vector<1x128xf32>
    %117 = vector.extract_strided_slice %116 {offsets = [0, 0], sizes = [1, 32], strides = [1, 1]} : vector<1x128xf32> to vector<1x32xf32>
    %118 = vector.extract_strided_slice %116 {offsets = [0, 32], sizes = [1, 32], strides = [1, 1]} : vector<1x128xf32> to vector<1x32xf32>
    %119 = vector.extract_strided_slice %116 {offsets = [0, 96], sizes = [1, 32], strides = [1, 1]} : vector<1x128xf32> to vector<1x32xf32>
    %120 = vector.extract_strided_slice %102 {offsets = [0, 64], sizes = [1, 32], strides = [1, 1]} : vector<1x128xf32> to vector<1x32xf32>
    %121 = math.tanh %120 : vector<1x32xf32>
    %122 = arith.mulf %118, %84 : vector<1x32xf32>
    %123 = arith.mulf %117, %121 : vector<1x32xf32>
    %124 = arith.addf %122, %123 : vector<1x32xf32>
    %125 = math.tanh %124 : vector<1x32xf32>
    %126 = arith.mulf %119, %125 : vector<1x32xf32>
    %c0_48 = arith.constant 0 : index
    %c3 = arith.constant 3 : index
    %127 = memref.load %arg0[%c0_48, %c3] : memref<3x8xi32, #tpu.memory_space<smem>>
    %c1_49 = arith.constant 1 : index
    %c3_50 = arith.constant 3 : index
    %128 = memref.load %arg0[%c1_49, %c3_50] : memref<3x8xi32, #tpu.memory_space<smem>>
    %129 = arith.sitofp %128 : i32 to f32
    %c2_51 = arith.constant 2 : index
    %c3_52 = arith.constant 3 : index
    %130 = memref.load %arg0[%c2_51, %c3_52] : memref<3x8xi32, #tpu.memory_space<smem>>
    %131 = arith.sitofp %130 : i32 to f32
    %132 = arith.index_cast %127 : i32 to index
    %c0_53 = arith.constant 0 : index
    %c0_54 = arith.constant 0 : index
    %133 = vector.load %arg1[%132, %c0_53, %c0_54] : memref<66x1x128xf32, #tpu.memory_space<vmem>>, vector<1x1x128xf32>
    %134 = vector.shape_cast %133 : vector<1x1x128xf32> to vector<1x128xf32>
    %135 = vector.broadcast %129 : f32 to vector<1x128xf32>
    %136 = arith.mulf %135, %2 : vector<1x128xf32>
    %137 = arith.addf %134, %136 : vector<1x128xf32>
    %138 = vector.broadcast %131 : f32 to vector<1x128xf32>
    %139 = arith.mulf %138, %4 : vector<1x128xf32>
    %140 = arith.addf %137, %139 : vector<1x128xf32>
    %cst_55 = arith.constant dense<0.000000e+00> : vector<1x128xf32>
    %141 = tpu.matmul %126, %0, %cst_55 {dimension_numbers = #tpu.dot_dimension_numbers<[1], [0], [0], [1], [0, 0, 1, 1], [], []>} : vector<1x32xf32>, vector<32x128xf32>, vector<1x128xf32> -> vector<1x128xf32>
    %142 = arith.addf %140, %141 : vector<1x128xf32>
    %cst_56 = arith.constant -3.000000e+01 : f32
    %cst_57 = arith.constant 3.000000e+01 : f32
    %143 = vector.broadcast %cst_56 : f32 to vector<1x128xf32>
    %144 = arith.maximumf %143, %142 : vector<1x128xf32>
    %145 = vector.broadcast %cst_57 : f32 to vector<1x128xf32>
    %146 = arith.minimumf %145, %144 : vector<1x128xf32>
    %cst_58 = arith.constant 0.000000e+00 : f32
    %147 = vector.broadcast %cst_58 : f32 to vector<1x128xf32>
    %148 = arith.subf %147, %146 : vector<1x128xf32>
    %149 = math.exp %148 : vector<1x128xf32>
    %cst_59 = arith.constant 1.000000e+00 : f32
    %150 = vector.broadcast %cst_59 : f32 to vector<1x128xf32>
    %151 = arith.addf %150, %149 : vector<1x128xf32>
    %152 = tpu.reciprocal %151 {approx = true} : vector<1x128xf32> -> vector<1x128xf32>
    %153 = arith.mulf %151, %152 : vector<1x128xf32>
    %cst_60 = arith.constant 2.000000e+00 : f32
    %154 = vector.broadcast %cst_60 : f32 to vector<1x128xf32>
    %155 = arith.subf %154, %153 : vector<1x128xf32>
    %156 = arith.mulf %152, %155 : vector<1x128xf32>
    %157 = vector.extract_strided_slice %156 {offsets = [0, 0], sizes = [1, 32], strides = [1, 1]} : vector<1x128xf32> to vector<1x32xf32>
    %158 = vector.extract_strided_slice %156 {offsets = [0, 32], sizes = [1, 32], strides = [1, 1]} : vector<1x128xf32> to vector<1x32xf32>
    %159 = vector.extract_strided_slice %156 {offsets = [0, 96], sizes = [1, 32], strides = [1, 1]} : vector<1x128xf32> to vector<1x32xf32>
    %160 = vector.extract_strided_slice %142 {offsets = [0, 64], sizes = [1, 32], strides = [1, 1]} : vector<1x128xf32> to vector<1x32xf32>
    %161 = math.tanh %160 : vector<1x32xf32>
    %162 = arith.mulf %158, %124 : vector<1x32xf32>
    %163 = arith.mulf %157, %161 : vector<1x32xf32>
    %164 = arith.addf %162, %163 : vector<1x32xf32>
    %165 = math.tanh %164 : vector<1x32xf32>
    %166 = arith.mulf %159, %165 : vector<1x32xf32>
    %c0_61 = arith.constant 0 : index
    %c4 = arith.constant 4 : index
    %167 = memref.load %arg0[%c0_61, %c4] : memref<3x8xi32, #tpu.memory_space<smem>>
    %c1_62 = arith.constant 1 : index
    %c4_63 = arith.constant 4 : index
    %168 = memref.load %arg0[%c1_62, %c4_63] : memref<3x8xi32, #tpu.memory_space<smem>>
    %169 = arith.sitofp %168 : i32 to f32
    %c2_64 = arith.constant 2 : index
    %c4_65 = arith.constant 4 : index
    %170 = memref.load %arg0[%c2_64, %c4_65] : memref<3x8xi32, #tpu.memory_space<smem>>
    %171 = arith.sitofp %170 : i32 to f32
    %172 = arith.index_cast %167 : i32 to index
    %c0_66 = arith.constant 0 : index
    %c0_67 = arith.constant 0 : index
    %173 = vector.load %arg1[%172, %c0_66, %c0_67] : memref<66x1x128xf32, #tpu.memory_space<vmem>>, vector<1x1x128xf32>
    %174 = vector.shape_cast %173 : vector<1x1x128xf32> to vector<1x128xf32>
    %175 = vector.broadcast %169 : f32 to vector<1x128xf32>
    %176 = arith.mulf %175, %2 : vector<1x128xf32>
    %177 = arith.addf %174, %176 : vector<1x128xf32>
    %178 = vector.broadcast %171 : f32 to vector<1x128xf32>
    %179 = arith.mulf %178, %4 : vector<1x128xf32>
    %180 = arith.addf %177, %179 : vector<1x128xf32>
    %cst_68 = arith.constant dense<0.000000e+00> : vector<1x128xf32>
    %181 = tpu.matmul %166, %0, %cst_68 {dimension_numbers = #tpu.dot_dimension_numbers<[1], [0], [0], [1], [0, 0, 1, 1], [], []>} : vector<1x32xf32>, vector<32x128xf32>, vector<1x128xf32> -> vector<1x128xf32>
    %182 = arith.addf %180, %181 : vector<1x128xf32>
    %cst_69 = arith.constant -3.000000e+01 : f32
    %cst_70 = arith.constant 3.000000e+01 : f32
    %183 = vector.broadcast %cst_69 : f32 to vector<1x128xf32>
    %184 = arith.maximumf %183, %182 : vector<1x128xf32>
    %185 = vector.broadcast %cst_70 : f32 to vector<1x128xf32>
    %186 = arith.minimumf %185, %184 : vector<1x128xf32>
    %cst_71 = arith.constant 0.000000e+00 : f32
    %187 = vector.broadcast %cst_71 : f32 to vector<1x128xf32>
    %188 = arith.subf %187, %186 : vector<1x128xf32>
    %189 = math.exp %188 : vector<1x128xf32>
    %cst_72 = arith.constant 1.000000e+00 : f32
    %190 = vector.broadcast %cst_72 : f32 to vector<1x128xf32>
    %191 = arith.addf %190, %189 : vector<1x128xf32>
    %192 = tpu.reciprocal %191 {approx = true} : vector<1x128xf32> -> vector<1x128xf32>
    %193 = arith.mulf %191, %192 : vector<1x128xf32>
    %cst_73 = arith.constant 2.000000e+00 : f32
    %194 = vector.broadcast %cst_73 : f32 to vector<1x128xf32>
    %195 = arith.subf %194, %193 : vector<1x128xf32>
    %196 = arith.mulf %192, %195 : vector<1x128xf32>
    %197 = vector.extract_strided_slice %196 {offsets = [0, 0], sizes = [1, 32], strides = [1, 1]} : vector<1x128xf32> to vector<1x32xf32>
    %198 = vector.extract_strided_slice %196 {offsets = [0, 32], sizes = [1, 32], strides = [1, 1]} : vector<1x128xf32> to vector<1x32xf32>
    %199 = vector.extract_strided_slice %196 {offsets = [0, 96], sizes = [1, 32], strides = [1, 1]} : vector<1x128xf32> to vector<1x32xf32>
    %200 = vector.extract_strided_slice %182 {offsets = [0, 64], sizes = [1, 32], strides = [1, 1]} : vector<1x128xf32> to vector<1x32xf32>
    %201 = math.tanh %200 : vector<1x32xf32>
    %202 = arith.mulf %198, %164 : vector<1x32xf32>
    %203 = arith.mulf %197, %201 : vector<1x32xf32>
    %204 = arith.addf %202, %203 : vector<1x32xf32>
    %205 = math.tanh %204 : vector<1x32xf32>
    %206 = arith.mulf %199, %205 : vector<1x32xf32>
    %c0_74 = arith.constant 0 : index
    %c5 = arith.constant 5 : index
    %207 = memref.load %arg0[%c0_74, %c5] : memref<3x8xi32, #tpu.memory_space<smem>>
    %c1_75 = arith.constant 1 : index
    %c5_76 = arith.constant 5 : index
    %208 = memref.load %arg0[%c1_75, %c5_76] : memref<3x8xi32, #tpu.memory_space<smem>>
    %209 = arith.sitofp %208 : i32 to f32
    %c2_77 = arith.constant 2 : index
    %c5_78 = arith.constant 5 : index
    %210 = memref.load %arg0[%c2_77, %c5_78] : memref<3x8xi32, #tpu.memory_space<smem>>
    %211 = arith.sitofp %210 : i32 to f32
    %212 = arith.index_cast %207 : i32 to index
    %c0_79 = arith.constant 0 : index
    %c0_80 = arith.constant 0 : index
    %213 = vector.load %arg1[%212, %c0_79, %c0_80] : memref<66x1x128xf32, #tpu.memory_space<vmem>>, vector<1x1x128xf32>
    %214 = vector.shape_cast %213 : vector<1x1x128xf32> to vector<1x128xf32>
    %215 = vector.broadcast %209 : f32 to vector<1x128xf32>
    %216 = arith.mulf %215, %2 : vector<1x128xf32>
    %217 = arith.addf %214, %216 : vector<1x128xf32>
    %218 = vector.broadcast %211 : f32 to vector<1x128xf32>
    %219 = arith.mulf %218, %4 : vector<1x128xf32>
    %220 = arith.addf %217, %219 : vector<1x128xf32>
    %cst_81 = arith.constant dense<0.000000e+00> : vector<1x128xf32>
    %221 = tpu.matmul %206, %0, %cst_81 {dimension_numbers = #tpu.dot_dimension_numbers<[1], [0], [0], [1], [0, 0, 1, 1], [], []>} : vector<1x32xf32>, vector<32x128xf32>, vector<1x128xf32> -> vector<1x128xf32>
    %222 = arith.addf %220, %221 : vector<1x128xf32>
    %cst_82 = arith.constant -3.000000e+01 : f32
    %cst_83 = arith.constant 3.000000e+01 : f32
    %223 = vector.broadcast %cst_82 : f32 to vector<1x128xf32>
    %224 = arith.maximumf %223, %222 : vector<1x128xf32>
    %225 = vector.broadcast %cst_83 : f32 to vector<1x128xf32>
    %226 = arith.minimumf %225, %224 : vector<1x128xf32>
    %cst_84 = arith.constant 0.000000e+00 : f32
    %227 = vector.broadcast %cst_84 : f32 to vector<1x128xf32>
    %228 = arith.subf %227, %226 : vector<1x128xf32>
    %229 = math.exp %228 : vector<1x128xf32>
    %cst_85 = arith.constant 1.000000e+00 : f32
    %230 = vector.broadcast %cst_85 : f32 to vector<1x128xf32>
    %231 = arith.addf %230, %229 : vector<1x128xf32>
    %232 = tpu.reciprocal %231 {approx = true} : vector<1x128xf32> -> vector<1x128xf32>
    %233 = arith.mulf %231, %232 : vector<1x128xf32>
    %cst_86 = arith.constant 2.000000e+00 : f32
    %234 = vector.broadcast %cst_86 : f32 to vector<1x128xf32>
    %235 = arith.subf %234, %233 : vector<1x128xf32>
    %236 = arith.mulf %232, %235 : vector<1x128xf32>
    %237 = vector.extract_strided_slice %236 {offsets = [0, 0], sizes = [1, 32], strides = [1, 1]} : vector<1x128xf32> to vector<1x32xf32>
    %238 = vector.extract_strided_slice %236 {offsets = [0, 32], sizes = [1, 32], strides = [1, 1]} : vector<1x128xf32> to vector<1x32xf32>
    %239 = vector.extract_strided_slice %236 {offsets = [0, 96], sizes = [1, 32], strides = [1, 1]} : vector<1x128xf32> to vector<1x32xf32>
    %240 = vector.extract_strided_slice %222 {offsets = [0, 64], sizes = [1, 32], strides = [1, 1]} : vector<1x128xf32> to vector<1x32xf32>
    %241 = math.tanh %240 : vector<1x32xf32>
    %242 = arith.mulf %238, %204 : vector<1x32xf32>
    %243 = arith.mulf %237, %241 : vector<1x32xf32>
    %244 = arith.addf %242, %243 : vector<1x32xf32>
    %245 = math.tanh %244 : vector<1x32xf32>
    %246 = arith.mulf %239, %245 : vector<1x32xf32>
    %c0_87 = arith.constant 0 : index
    %c6 = arith.constant 6 : index
    %247 = memref.load %arg0[%c0_87, %c6] : memref<3x8xi32, #tpu.memory_space<smem>>
    %c1_88 = arith.constant 1 : index
    %c6_89 = arith.constant 6 : index
    %248 = memref.load %arg0[%c1_88, %c6_89] : memref<3x8xi32, #tpu.memory_space<smem>>
    %249 = arith.sitofp %248 : i32 to f32
    %c2_90 = arith.constant 2 : index
    %c6_91 = arith.constant 6 : index
    %250 = memref.load %arg0[%c2_90, %c6_91] : memref<3x8xi32, #tpu.memory_space<smem>>
    %251 = arith.sitofp %250 : i32 to f32
    %252 = arith.index_cast %247 : i32 to index
    %c0_92 = arith.constant 0 : index
    %c0_93 = arith.constant 0 : index
    %253 = vector.load %arg1[%252, %c0_92, %c0_93] : memref<66x1x128xf32, #tpu.memory_space<vmem>>, vector<1x1x128xf32>
    %254 = vector.shape_cast %253 : vector<1x1x128xf32> to vector<1x128xf32>
    %255 = vector.broadcast %249 : f32 to vector<1x128xf32>
    %256 = arith.mulf %255, %2 : vector<1x128xf32>
    %257 = arith.addf %254, %256 : vector<1x128xf32>
    %258 = vector.broadcast %251 : f32 to vector<1x128xf32>
    %259 = arith.mulf %258, %4 : vector<1x128xf32>
    %260 = arith.addf %257, %259 : vector<1x128xf32>
    %cst_94 = arith.constant dense<0.000000e+00> : vector<1x128xf32>
    %261 = tpu.matmul %246, %0, %cst_94 {dimension_numbers = #tpu.dot_dimension_numbers<[1], [0], [0], [1], [0, 0, 1, 1], [], []>} : vector<1x32xf32>, vector<32x128xf32>, vector<1x128xf32> -> vector<1x128xf32>
    %262 = arith.addf %260, %261 : vector<1x128xf32>
    %cst_95 = arith.constant -3.000000e+01 : f32
    %cst_96 = arith.constant 3.000000e+01 : f32
    %263 = vector.broadcast %cst_95 : f32 to vector<1x128xf32>
    %264 = arith.maximumf %263, %262 : vector<1x128xf32>
    %265 = vector.broadcast %cst_96 : f32 to vector<1x128xf32>
    %266 = arith.minimumf %265, %264 : vector<1x128xf32>
    %cst_97 = arith.constant 0.000000e+00 : f32
    %267 = vector.broadcast %cst_97 : f32 to vector<1x128xf32>
    %268 = arith.subf %267, %266 : vector<1x128xf32>
    %269 = math.exp %268 : vector<1x128xf32>
    %cst_98 = arith.constant 1.000000e+00 : f32
    %270 = vector.broadcast %cst_98 : f32 to vector<1x128xf32>
    %271 = arith.addf %270, %269 : vector<1x128xf32>
    %272 = tpu.reciprocal %271 {approx = true} : vector<1x128xf32> -> vector<1x128xf32>
    %273 = arith.mulf %271, %272 : vector<1x128xf32>
    %cst_99 = arith.constant 2.000000e+00 : f32
    %274 = vector.broadcast %cst_99 : f32 to vector<1x128xf32>
    %275 = arith.subf %274, %273 : vector<1x128xf32>
    %276 = arith.mulf %272, %275 : vector<1x128xf32>
    %277 = vector.extract_strided_slice %276 {offsets = [0, 0], sizes = [1, 32], strides = [1, 1]} : vector<1x128xf32> to vector<1x32xf32>
    %278 = vector.extract_strided_slice %276 {offsets = [0, 32], sizes = [1, 32], strides = [1, 1]} : vector<1x128xf32> to vector<1x32xf32>
    %279 = vector.extract_strided_slice %276 {offsets = [0, 96], sizes = [1, 32], strides = [1, 1]} : vector<1x128xf32> to vector<1x32xf32>
    %280 = vector.extract_strided_slice %262 {offsets = [0, 64], sizes = [1, 32], strides = [1, 1]} : vector<1x128xf32> to vector<1x32xf32>
    %281 = math.tanh %280 : vector<1x32xf32>
    %282 = arith.mulf %278, %244 : vector<1x32xf32>
    %283 = arith.mulf %277, %281 : vector<1x32xf32>
    %284 = arith.addf %282, %283 : vector<1x32xf32>
    %285 = math.tanh %284 : vector<1x32xf32>
    %286 = arith.mulf %279, %285 : vector<1x32xf32>
    %c0_100 = arith.constant 0 : index
    %c7 = arith.constant 7 : index
    %287 = memref.load %arg0[%c0_100, %c7] : memref<3x8xi32, #tpu.memory_space<smem>>
    %c1_101 = arith.constant 1 : index
    %c7_102 = arith.constant 7 : index
    %288 = memref.load %arg0[%c1_101, %c7_102] : memref<3x8xi32, #tpu.memory_space<smem>>
    %289 = arith.sitofp %288 : i32 to f32
    %c2_103 = arith.constant 2 : index
    %c7_104 = arith.constant 7 : index
    %290 = memref.load %arg0[%c2_103, %c7_104] : memref<3x8xi32, #tpu.memory_space<smem>>
    %291 = arith.sitofp %290 : i32 to f32
    %292 = arith.index_cast %287 : i32 to index
    %c0_105 = arith.constant 0 : index
    %c0_106 = arith.constant 0 : index
    %293 = vector.load %arg1[%292, %c0_105, %c0_106] : memref<66x1x128xf32, #tpu.memory_space<vmem>>, vector<1x1x128xf32>
    %294 = vector.shape_cast %293 : vector<1x1x128xf32> to vector<1x128xf32>
    %295 = vector.broadcast %289 : f32 to vector<1x128xf32>
    %296 = arith.mulf %295, %2 : vector<1x128xf32>
    %297 = arith.addf %294, %296 : vector<1x128xf32>
    %298 = vector.broadcast %291 : f32 to vector<1x128xf32>
    %299 = arith.mulf %298, %4 : vector<1x128xf32>
    %300 = arith.addf %297, %299 : vector<1x128xf32>
    %cst_107 = arith.constant dense<0.000000e+00> : vector<1x128xf32>
    %301 = tpu.matmul %286, %0, %cst_107 {dimension_numbers = #tpu.dot_dimension_numbers<[1], [0], [0], [1], [0, 0, 1, 1], [], []>} : vector<1x32xf32>, vector<32x128xf32>, vector<1x128xf32> -> vector<1x128xf32>
    %302 = arith.addf %300, %301 : vector<1x128xf32>
    %cst_108 = arith.constant -3.000000e+01 : f32
    %cst_109 = arith.constant 3.000000e+01 : f32
    %303 = vector.broadcast %cst_108 : f32 to vector<1x128xf32>
    %304 = arith.maximumf %303, %302 : vector<1x128xf32>
    %305 = vector.broadcast %cst_109 : f32 to vector<1x128xf32>
    %306 = arith.minimumf %305, %304 : vector<1x128xf32>
    %cst_110 = arith.constant 0.000000e+00 : f32
    %307 = vector.broadcast %cst_110 : f32 to vector<1x128xf32>
    %308 = arith.subf %307, %306 : vector<1x128xf32>
    %309 = math.exp %308 : vector<1x128xf32>
    %cst_111 = arith.constant 1.000000e+00 : f32
    %310 = vector.broadcast %cst_111 : f32 to vector<1x128xf32>
    %311 = arith.addf %310, %309 : vector<1x128xf32>
    %312 = tpu.reciprocal %311 {approx = true} : vector<1x128xf32> -> vector<1x128xf32>
    %313 = arith.mulf %311, %312 : vector<1x128xf32>
    %cst_112 = arith.constant 2.000000e+00 : f32
    %314 = vector.broadcast %cst_112 : f32 to vector<1x128xf32>
    %315 = arith.subf %314, %313 : vector<1x128xf32>
    %316 = arith.mulf %312, %315 : vector<1x128xf32>
    %317 = vector.extract_strided_slice %316 {offsets = [0, 0], sizes = [1, 32], strides = [1, 1]} : vector<1x128xf32> to vector<1x32xf32>
    %318 = vector.extract_strided_slice %316 {offsets = [0, 32], sizes = [1, 32], strides = [1, 1]} : vector<1x128xf32> to vector<1x32xf32>
    %319 = vector.extract_strided_slice %316 {offsets = [0, 96], sizes = [1, 32], strides = [1, 1]} : vector<1x128xf32> to vector<1x32xf32>
    %320 = vector.extract_strided_slice %302 {offsets = [0, 64], sizes = [1, 32], strides = [1, 1]} : vector<1x128xf32> to vector<1x32xf32>
    %321 = math.tanh %320 : vector<1x32xf32>
    %322 = arith.mulf %318, %284 : vector<1x32xf32>
    %323 = arith.mulf %317, %321 : vector<1x32xf32>
    %324 = arith.addf %322, %323 : vector<1x32xf32>
    %325 = math.tanh %324 : vector<1x32xf32>
    %326 = arith.mulf %319, %325 : vector<1x32xf32>
    %cst_113 = arith.constant 0.000000e+00 : f32
    %327 = vector.broadcast %cst_113 : f32 to vector<1x32xf32>
    %328 = arith.maximumf %326, %327 : vector<1x32xf32>
    %c32 = arith.constant 32 : index
    %c0_114 = arith.constant 0 : index
    %329 = vector.load %arg2[%c32, %c0_114] : memref<120x128xf32, #tpu.memory_space<vmem>>, vector<32x128xf32>
    %c64_115 = arith.constant 64 : index
    %c0_116 = arith.constant 0 : index
    %330 = vector.load %arg2[%c64_115, %c0_116] : memref<120x128xf32, #tpu.memory_space<vmem>>, vector<32x128xf32>
    %c96 = arith.constant 96 : index
    %c0_117 = arith.constant 0 : index
    %331 = vector.load %arg2[%c96, %c0_117] : memref<120x128xf32, #tpu.memory_space<vmem>>, vector<16x128xf32>
    %c112 = arith.constant 112 : index
    %c0_118 = arith.constant 0 : index
    %332 = vector.load %arg2[%c112, %c0_118] : memref<120x128xf32, #tpu.memory_space<vmem>>, vector<1x128xf32>
    %c113 = arith.constant 113 : index
    %c0_119 = arith.constant 0 : index
    %333 = vector.load %arg2[%c113, %c0_119] : memref<120x128xf32, #tpu.memory_space<vmem>>, vector<1x128xf32>
    %c114 = arith.constant 114 : index
    %c0_120 = arith.constant 0 : index
    %334 = vector.load %arg2[%c114, %c0_120] : memref<120x128xf32, #tpu.memory_space<vmem>>, vector<1x128xf32>
    %cst_121 = arith.constant dense<0.000000e+00> : vector<1x128xf32>
    %335 = tpu.matmul %328, %329, %cst_121 {dimension_numbers = #tpu.dot_dimension_numbers<[1], [0], [0], [1], [0, 0, 1, 1], [], []>} : vector<1x32xf32>, vector<32x128xf32>, vector<1x128xf32> -> vector<1x128xf32>
    %336 = arith.addf %335, %332 : vector<1x128xf32>
    %cst_122 = arith.constant 0.000000e+00 : f32
    %337 = vector.broadcast %cst_122 : f32 to vector<1x128xf32>
    %338 = arith.maximumf %336, %337 : vector<1x128xf32>
    %339 = vector.extract_strided_slice %338 {offsets = [0, 0], sizes = [1, 32], strides = [1, 1]} : vector<1x128xf32> to vector<1x32xf32>
    %cst_123 = arith.constant dense<0.000000e+00> : vector<1x128xf32>
    %340 = tpu.matmul %339, %330, %cst_123 {dimension_numbers = #tpu.dot_dimension_numbers<[1], [0], [0], [1], [0, 0, 1, 1], [], []>} : vector<1x32xf32>, vector<32x128xf32>, vector<1x128xf32> -> vector<1x128xf32>
    %341 = arith.addf %340, %333 : vector<1x128xf32>
    %cst_124 = arith.constant 0.000000e+00 : f32
    %342 = vector.broadcast %cst_124 : f32 to vector<1x128xf32>
    %343 = arith.maximumf %341, %342 : vector<1x128xf32>
    %344 = vector.extract_strided_slice %343 {offsets = [0, 0], sizes = [1, 16], strides = [1, 1]} : vector<1x128xf32> to vector<1x16xf32>
    %cst_125 = arith.constant dense<0.000000e+00> : vector<1x128xf32>
    %345 = tpu.matmul %344, %331, %cst_125 {dimension_numbers = #tpu.dot_dimension_numbers<[1], [0], [0], [1], [0, 0, 1, 1], [], []>} : vector<1x16xf32>, vector<16x128xf32>, vector<1x128xf32> -> vector<1x128xf32>
    %346 = arith.addf %345, %334 : vector<1x128xf32>
    %347 = vector.extract_strided_slice %346 {offsets = [0, 0], sizes = [1, 64], strides = [1, 1]} : vector<1x128xf32> to vector<1x64xf32>
    %348 = tpu.concatenate %326, %324, %347 in 1 : vector<1x32xf32>, vector<1x32xf32>, vector<1x64xf32> -> vector<1x128xf32>
    %c0_126 = arith.constant 0 : index
    %c0_127 = arith.constant 0 : index
    %349 = vector.load %arg4[%c0_126, %c0_127] : memref<1x128xf32, #tpu.memory_space<vmem>>, vector<1x128xf32>
    tpu.vector_store %arg4[%c0_126, %c0_127], %348 {strides = array<i32>} : memref<1x128xf32, #tpu.memory_space<vmem>>, vector<1x128xf32>,
    return
  }
}

</mosaic_0001>

<bundles_post_ra>
// kernel: _forward_impl.1
= control target key start
LH: loop header
LB: loop body
LE: loop exit
PB: predicated region body
PF: predicated region fallthrough
CT: control target
= control target key end

     0   :  { %9 = vsyncpa [#allocation4], 0  ;;  %s1951_s0 = inlined_call_operand.vmem [shape: s32[3,8], index: 0, kind: input, shape index: {}]   ;;  %s1952_s1 = inlined_call_operand.hbm [shape: f32[66,1,128], index: 1, kind: input, shape index: {}]   ;;  %s1953_s2 = inlined_call_operand.hbm [shape: f32[120,128], index: 2, kind: input, shape index: {}]   ;;  %s1954_s3 = inlined_call_operand.vmem [shape: f32[2,32], index: 3, kind: input, shape index: {}]   ;;  %s1955_s4 = inlined_call_operand.vmem [shape: f32[1,128], index: 4, kind: output, shape index: {}]  }
   0x1   :  { %10 = vsyncpa [#allocation3], 0  ;;  %s18_s17 = sshll.u32 %s1951_s0, 4  ;;  %s19_s17 = int_to_ptr.vmem [resolvable:$true] %s18_s17 }
   0x2   :  { %11 = vsyncpa [#allocation7], 0  ;;  %s1675_s18 = scalar_lea.vmem %s19_s17, 64  ;;  %p1680_p1 = scmp.lt.s32.totalorder %s19_s17, %s19_s17 }
   0x3   :  { %p1676_p0 = scmp.ne.s32.totalorder %s19_s17, %s1675_s18  ;;  %p1681_p2 = scmp.lt.s32.totalorder %s1675_s18, %s1675_s18 }
   0x5   :  { %p1682_p3 = por %p1681_p2, %p1680_p1 }
   0x7   :  { %p1683_p4 = pnand %p1682_p3, %p1676_p0 }
   0x9   :  { %1686 = shalt.err (!%p1683_p4)
}
   0xa   :  { %s1737_s19 = smov [#allocation2]   ;;  %s1738_s20 = smov [#allocation5]  }
   0xb   :  { %21 = dma.vmem_to_smem %s19_s17, 64, %s1737_s19, [#allocation4]  }
   0xc   :  { %s27_s21 = sshll.u32 %s1738_s20, 4  ;;  %s1687_s24 = scalar_lea.hbm %s1952_s1, 1056  ;;  %s28_s21 = int_to_ptr.vmem [resolvable:$true] %s27_s21 }
   0xd   :  { %p1688_p5 = scmp.ne.s32.totalorder %s1952_s1, %s1687_s24  ;;  %p1691_p6 = scmp.lt.u32.totalorder %s1687_s24, %s1952_s1 }
   0xf   :  { %p1693_p7 = pnand %p1691_p6, %p1688_p5 }
  0x11   :  { %1696 = shalt.err (!%p1693_p7)
}
  0x12   :  { %s1697_s28 = scalar_lea.vmem %s28_s21, 1056  ;;  %p1702_p9 = scmp.lt.s32.totalorder %s28_s21, %s28_s21 }
  0x13   :  { %p1698_p8 = scmp.ne.s32.totalorder %s28_s21, %s1697_s28  ;;  %p1703_p10 = scmp.lt.s32.totalorder %s1697_s28, %s1697_s28 }
  0x15   :  { %p1704_p11 = por %p1703_p10, %p1702_p9 }
  0x17   :  { %p1705_p12 = pnand %p1704_p11, %p1698_p8 }
  0x19   :  { %1708 = shalt.err (!%p1705_p12)
}
  0x1a   :  { %s1739_s29 = smov 16   ;;  %s1740_s30 = smov 1  }
  0x1b   :  { %33 = dma.hbm_to_vmem [thread:$0]  %s1952_s1, 1056, %s28_s21, [#allocation3], %s1739_s29, %s1739_s29, %s1740_s30  }
  0x1c   :  { %s1741_s7 = smov [#allocation6]   ;;  %s1709_s11 = scalar_lea.hbm %s1953_s2, 1920 }
  0x1d   :  { %s39_s8 = sshll.u32 %s1741_s7, 4  ;;  %p1710_p13 = scmp.ne.s32.totalorder %s1953_s2, %s1709_s11  ;;  %s40_s8 = int_to_ptr.vmem [resolvable:$true] %s39_s8 }
  0x1e   :  { %p1713_p0 = scmp.lt.u32.totalorder %s1709_s11, %s1953_s2 }
  0x20   :  { %p1715_p1 = pnand %p1713_p0, %p1710_p13 }
  0x22   :  { %1718 = shalt.err (!%p1715_p1)
}
  0x23   :  { %s1719_s16 = scalar_lea.vmem %s40_s8, 1920  ;;  %p1724_p3 = scmp.lt.s32.totalorder %s40_s8, %s40_s8 }
  0x24   :  { %p1720_p2 = scmp.ne.s32.totalorder %s40_s8, %s1719_s16  ;;  %p1725_p4 = scmp.lt.s32.totalorder %s1719_s16, %s1719_s16 }
  0x26   :  { %p1726_p5 = por %p1725_p4, %p1724_p3 }
  0x28   :  { %p1727_p6 = pnand %p1726_p5, %p1720_p2 }
  0x2a   :  { %1730 = shalt.err (!%p1727_p6)
}
  0x2b   :  { %s1742_s1 = smov 128   ;;  %s1743_s17 = smov 8  }
  0x2c   :  { %45 = dma.hbm_to_vmem [thread:$0]  %s1953_s2, 1920, %s40_s8, [#allocation7], %s1742_s1, %s1742_s1, %s1743_s17  }
  0x2d   :  { %1731 = dma.done.wait [#allocation4], 64  }
  0x2e   :  { %1732 = vsyncadd [#allocation4], 4294967232 }
  0x2f   :  { %1733 = dma.done.wait [#allocation3], 1056  }
  0x30   :  { %1734 = vsyncadd [#allocation3], 4294966240 }
  0x31   :  { %1735 = dma.done.wait [#allocation7], 1920  }
  0x32   :  { %1736 = vsyncadd [#allocation7], 4294965376 }
  0x33   :  { %57 = sfence }
  0x34   :  { %v58_v0 = vld [vmem:[#allocation6] sm:$0xff]  ;;  %v59_v1 = vld [vmem:[#allocation6 + $0x8] sm:$0xff]  ;;  %v60_v2 = vld [vmem:[#allocation6 + $0x10] sm:$0xff]  ;;  %v1744_v3 = vmov 0.0|0.0   ;;  %vm1745_vm0 = vmmov 0   ;;  %v1746_v6 = vmov 0.0   ;;  %v178_v23 = vlaneseq }
  0x35   :  { %1535 = vmatprep.subr.bf16.mxu0 %v1744_v3  ;;  %v1803_v4 = vpack.c.bf16 %v59_v1, %v58_v0  ;;  %v61_v5 = vld [vmem:[#allocation6 + $0x18] sm:$0xff]  ;;  %1426 = vmatprep.mubr.msk.f32.mxu0 %vm1745_vm0, %v1746_v6  ;;  %vm81_vm1 = vcmask 261120   ;;  %s1322_s21 = sld [smem:[#allocation2 + $0x80]]  ;;  %v1747_v21 = vmov 1966171168   ;;  %s1748_s28 = smov 64  }
  0x36   :  { %1541 = vmatprep.subr.bf16.mxu1 %v1744_v3  ;;  %1437 = vmatprep.mubr.msk.f32.mxu1 %vm1745_vm0, %v1746_v6  ;;  %v1811_v7 = vpack.c.bf16 %v61_v5, %v60_v2  ;;  %v66_v8 = vld [vmem:[%s1954_s3] sm:$0x1]  ;;  %s1323_s22 = sld [smem:[#allocation2 + $0x100]]  ;;  %v1833_v12 = vld [vmem:[#allocation5 + $0x41] sm:$0x1]  ;;  %v176_v22 = vunpack.c.l.s4 %v1747_v21  ;;  %v179_v25 = vshrl.u32 %v178_v23, 7 }
  0x37   :  { %1537 = vmatpush3.bf16.msra.mxu0 %v1803_v4  ;;  %1543 = vmatpush3.bf16.msra.mxu1 %v1803_v4  ;;  %s68_s23 = sld [smem:[#allocation2]]  ;;  %v1830_v9 = vld [vmem:[#allocation5 + $0x40] sm:$0x1]  ;;  %s1749_s29 = smov 32   ;;  %vm1217_vm2 = vcmask 130048   ;;  %vm1304_vm3 = vcmask 523264  }
  0x38   :  { %1538 = vmatprep.subr.bf16.mxu0 %v1744_v3  ;;  %1544 = vmatprep.subr.bf16.mxu1 %v1744_v3  ;;  %v177_v24 = vunpack.c.0.s8 %v176_v22  ;;  %v1326_v27 = vld.sshfl [vmem:[%s1954_s3 + $0x1] sm:$0x1 pattern:$0x75316420]  ;;  %v1843_v46 = vsub.s32 0, %v179_v25  ;;  %s1328_s3 = sld [smem:[#allocation2 + $0x81]] }
  0x39   :  { %s1329_s30 = sld [smem:[#allocation2 + $0x101]]  ;;  %s1333_s9 = sld [smem:[#allocation2 + $0x82]] }
  0x3a   :  { %v180_v26 = vsub.s32 %v177_v24, %v179_v25  ;;  %s1327_s5 = sld [smem:[#allocation2 + $0x1]]  ;;  %s1334_s10 = sld [smem:[#allocation2 + $0x102]] }
  0x3b   :  { %1540 = vmatpush3.bf16.msra.mxu0 %v1811_v7  ;;  %1546 = vmatpush3.bf16.msra.mxu1 %v1811_v7  ;;  %s70_s24 = scvt.s32.f32 %s1322_s21  ;;  %s1332_s11 = sld [smem:[#allocation2 + $0x2]] }
  0x3c   :  { %1547 = vmatprep.subr.bf16.mxu0 %v1744_v3  ;;  %1553 = vmatprep.subr.bf16.mxu1 %v1744_v3  ;;  %s72_s25 = scvt.s32.f32 %s1323_s22  ;;  %v181_v29 = vrot.slane %v1326_v27, %v180_v26  ;;  %s1338_s15 = sld [smem:[#allocation2 + $0x83]] }
  0x3d   :  { %v75_v10 = vstv %s70_s24  ;;  %s73_s0 = scalar_lea.vmem [#allocation5], %s68_s23  ;;  %s1339_s16 = sld [smem:[#allocation2 + $0x103]] }
  0x3e   :  { %1427 = vmatmul.mubr.msk.f32.vlgmr.msra.gmra.mrb[0].mxu0 %vm81_vm1, %v66_v8  ;;  %v76_v11 = vmul.f32 %v75_v10, %v1830_v9  ;;  %v74_v13 = vld [vmem:[%s73_s0] sm:$0x1]  ;;  %v78_v14 = vstv %s72_s25  ;;  %s204_s6 = scvt.s32.f32 %s1328_s3  ;;  %s1337_s1 = sld [smem:[#allocation2 + $0x3]] }
  0x3f   :  { %1549 = vmatpush3.bf16.msra.mxu0 %v1803_v4  ;;  %1448 = vmatprep.mubr.msk.f32.mxu0 %vm1745_vm0, %v1746_v6  ;;  %v79_v16 = vmul.f32 %v78_v14, %v1833_v12  ;;  %s206_s7 = scvt.s32.f32 %s1329_s30  ;;  %s325_s12 = scvt.s32.f32 %s1333_s9 }
  0x40   :  { %1550 = vmatprep.subr.bf16.mxu0 %v1744_v3  ;;  %v77_v15 = vadd.f32 %v76_v11, %v74_v13  ;;  %v209_v51 = vstv %s204_s6  ;;  %s207_s8 = scalar_lea.vmem [#allocation5], %s1327_s5  ;;  %s327_s13 = scvt.s32.f32 %s1334_s10 }
  0x41   :  { %v210_v52 = vmul.f32 %v209_v51, %v1830_v9  ;;  %v208_v53 = vld [vmem:[%s207_s8] sm:$0x1]  ;;  %v212_v54 = vstv %s206_s7  ;;  %v330_v23 = vstv %s325_s12  ;;  %s328_s14 = scalar_lea.vmem [#allocation5], %s1332_s11  ;;  %s1343_s2 = sld [smem:[#allocation2 + $0x84]] }
  0x42   :  { %v80_v17 = vadd.f32 %v79_v16, %v77_v15  ;;  %v213_v56 = vmul.f32 %v212_v54, %v1833_v12  ;;  %v331_v24 = vmul.f32 %v330_v23, %v1830_v9  ;;  %v329_v25 = vld [vmem:[%s328_s14] sm:$0x1]  ;;  %v333_v26 = vstv %s327_s13  ;;  %s446_s17 = scvt.s32.f32 %s1338_s15  ;;  %s1344_s20 = sld [smem:[#allocation2 + $0x104]] }
  0x43   :  { %1552 = vmatpush3.bf16.msra.mxu0 %v1811_v7  ;;  %v211_v55 = vadd.f32 %v210_v52, %v208_v53  ;;  %s448_s18 = scvt.s32.f32 %s1339_s16  ;;  %s1342_s21 = sld [smem:[#allocation2 + $0x4]] }
  0x44   :  { %1559 = vmatprep.subr.bf16.mxu0 %v1744_v3  ;;  %v332_v27 = vadd.f32 %v331_v24, %v329_v25  ;;  %v451_v54 = vstv %s446_s17  ;;  %s449_s19 = scalar_lea.vmem [#allocation5], %s1337_s1  ;;  %s1348_s25 = sld [smem:[#allocation2 + $0x85]] }
  0x45   :  { %v214_v57 = vadd.f32 %v213_v56, %v211_v55  ;;  %v452_v55 = vmul.f32 %v451_v54, %v1830_v9  ;;  %v450_v56 = vld [vmem:[%s449_s19] sm:$0x1]  ;;  %s1349_s0 = sld [smem:[#allocation2 + $0x105]]  ;;  %s1353_s5 = sld [smem:[#allocation2 + $0x86]] }
  0x46   :  { %s1347_s26 = sld [smem:[#allocation2 + $0x5]]  ;;  %s1354_s6 = sld [smem:[#allocation2 + $0x106]] }
  0x47   :  { %s567_s22 = scvt.s32.f32 %s1343_s2  ;;  %s1352_s7 = sld [smem:[#allocation2 + $0x6]] }
  0x48   :  { %s569_s23 = scvt.s32.f32 %s1344_s20  ;;  %s1358_s11 = sld [smem:[#allocation2 + $0x87]] }
  0x49   :  { %s570_s24 = scalar_lea.vmem [#allocation5], %s1342_s21  ;;  %s1359_s12 = sld [smem:[#allocation2 + $0x107]] }
  0x4a   :  { %s688_s27 = scvt.s32.f32 %s1348_s25  ;;  %s1357_s13 = sld [smem:[#allocation2 + $0x7]] }
  0x4b   :  { %s690_s3 = scvt.s32.f32 %s1349_s0  ;;  %s809_s8 = scvt.s32.f32 %s1353_s5 }
  0x4c   :  { %s691_s30 = scalar_lea.vmem [#allocation5], %s1347_s26  ;;  %s811_s9 = scvt.s32.f32 %s1354_s6 }
  0x4d   :  { %s812_s10 = scalar_lea.vmem [#allocation5], %s1352_s7 }
  0x4e   :  { %s930_s14 = scvt.s32.f32 %s1358_s11 }
  0x4f   :  { %s932_s15 = scvt.s32.f32 %s1359_s12 }
  0x50   :  { %s933_s16 = scalar_lea.vmem [#allocation5], %s1357_s13 }
 0x111   :  { %v151_v18 = vpop.f32.mrb[0].mxu0 }
 0x112   :  { %v155_v19 = vadd.f32 %v151_v18, %v80_v17  ;;  %v1428_v20 = vpop.f32.mrb[1].mxu0 }
 0x114   :  { %1611 = vtanh.f32 %v155_v19  ;;  %v1325_v30 = vclamps-f32 %v155_v19, 30.0 }
 0x116   :  { %v158_v31 = vsub.f32 0.0, %v1325_v30 }
 0x118   :  { %v159_v32 = vmul.f32 1.442695, %v158_v31 }
 0x11a   :  { %1613 = vpow2.f32 %v159_v32 }
 0x11e   :  { %v1612_v28 = vpop.eup %1611 }
 0x11f   :  { %187 = vrot.lane.b32.xlu0 %v1612_v28, %s1748_s28  ;;  %v334_v28 = vmul.f32 %v333_v26, %v1833_v12  ;;  %v572_v26 = vstv %s567_s22 }
 0x123   :  { %182 = vrot.lane.b32.xlu0 %v181_v29, %s1749_s29  ;;  %v335_v29 = vadd.f32 %v334_v28, %v332_v27  ;;  %v573_v27 = vmul.f32 %v572_v26, %v1830_v9  ;;  %v571_v28 = vld [vmem:[%s570_s24] sm:$0x1] }
 0x124   :  { %v1614_v33 = vpop.eup %1613 }
 0x125   :  { %v161_v34 = vadd.f32 1.0, %v1614_v33 }
 0x127   :  { %1615 = vrcp.f32 %v161_v34 }
 0x131   :  { %v1616_v35 = vpop.eup %1615 }
 0x132   :  { %v163_v36 = vmul.f32 %v1616_v35, %v161_v34 }
 0x134   :  { %v164_v37 = vsub.f32 2.0, %v163_v36 }
 0x136   :  { %v165_v38 = vmul.f32 %v1616_v35, %v164_v37 }
 0x191   :  { %v188_v39 = vpop.permute.xlu0 %187 }
 0x192   :  { %v190_v40 = vmul.f32 %v188_v39, %v165_v38 }
 0x194   :  { %192 = vrot.lane.b32.xlu1 %v190_v40, %s1749_s29 }
 0x195   :  { %v183_v41 = vpop.permute.xlu0 %182 }
 0x196   :  { %v185_v42 = vmul.f32 %v183_v41, %v165_v38 }
 0x206   :  { %v193_v43 = vpop.permute.xlu1 %192 }
 0x207   :  { %v195_v44 = vadd.f32 %v193_v43, %v185_v42 }
 0x209   :  { %1617 = vtanh.f32 %v195_v44 }
 0x213   :  { %v1618_v45 = vpop.eup %1617 }
 0x214   :  { %198 = vrot.lane.b32.xlu1 %v1618_v45, %s1748_s28 }
 0x286   :  { %v199_v47 = vpop.permute.xlu1 %198 }
 0x287   :  { %v201_v48 = vmul.f32 %v199_v47, %v165_v38 }
 0x289   :  { %v219_v49 = vrot.slane %v201_v48, %v1843_v46 }
 0x28b   :  { %220 = vrot.lane.b32.xlu0 %v219_v49, %s1749_s29 }
 0x2fd   :  { %v221_v50 = vpop.permute.xlu0 %220 }
 0x2fe   :  { %1438 = vmatmul.mubr.msk.f32.vlgmr.msra.gmra.mrb[0].mxu1 %vm81_vm1, %v221_v50 }
 0x2ff   :  { %1555 = vmatpush3.bf16.msra.mxu1 %v1803_v4  ;;  %1459 = vmatprep.mubr.msk.f32.mxu1 %vm1745_vm0, %v1746_v6 }
 0x300   :  { %1556 = vmatprep.subr.bf16.mxu1 %v1744_v3 }
 0x303   :  { %1558 = vmatpush3.bf16.msra.mxu1 %v1811_v7 }
 0x304   :  { %1565 = vmatprep.subr.bf16.mxu1 %v1744_v3 }
 0x3d1   :  { %v290_v58 = vpop.f32.mrb[0].mxu1 }
 0x3d2   :  { %v294_v59 = vadd.f32 %v290_v58, %v214_v57  ;;  %v1439_v60 = vpop.f32.mrb[1].mxu1  ;;  %v454_v57 = vstv %s448_s18  ;;  %v453_v58 = vadd.f32 %v452_v55, %v450_v56 }
 0x3d4   :  { %1619 = vtanh.f32 %v294_v59  ;;  %v1331_v62 = vclamps-f32 %v294_v59, 30.0  ;;  %v455_v59 = vmul.f32 %v454_v57, %v1833_v12  ;;  %v693_v57 = vstv %s688_s27 }
 0x3d6   :  { %v297_v63 = vsub.f32 0.0, %v1331_v62  ;;  %v456_v60 = vadd.f32 %v455_v59, %v453_v58  ;;  %v694_v58 = vmul.f32 %v693_v57, %v1830_v9  ;;  %v692_v59 = vld [vmem:[%s691_s30] sm:$0x1] }
 0x3d8   :  { %v298_v0 = vmul.f32 1.442695, %v297_v63 }
 0x3da   :  { %1621 = vpow2.f32 %v298_v0 }
 0x3de   :  { %v1620_v61 = vpop.eup %1619 }
 0x3df   :  { %308 = vrot.lane.b32.xlu1 %v1620_v61, %s1748_s28 }
 0x3e4   :  { %v1622_v1 = vpop.eup %1621 }
 0x3e5   :  { %v300_v2 = vadd.f32 1.0, %v1622_v1 }
 0x3e7   :  { %1623 = vrcp.f32 %v300_v2 }
 0x3f1   :  { %v1624_v5 = vpop.eup %1623 }
 0x3f2   :  { %v302_v8 = vmul.f32 %v1624_v5, %v300_v2 }
 0x3f4   :  { %v303_v10 = vsub.f32 2.0, %v302_v8 }
 0x3f6   :  { %v304_v11 = vmul.f32 %v1624_v5, %v303_v10 }
 0x3f8   :  { %v306_v15 = vmul.f32 %v304_v11, %v195_v44 }
 0x451   :  { %v309_v13 = vpop.permute.xlu1 %308 }
 0x452   :  { %v311_v14 = vmul.f32 %v309_v13, %v304_v11 }
 0x454   :  { %313 = vrot.lane.b32.xlu0 %v311_v14, %s1749_s29 }
 0x4c6   :  { %v314_v16 = vpop.permute.xlu0 %313 }
 0x4c7   :  { %v316_v17 = vadd.f32 %v314_v16, %v306_v15 }
 0x4c9   :  { %1625 = vtanh.f32 %v316_v17 }
 0x4d3   :  { %v1626_v18 = vpop.eup %1625 }
 0x4d4   :  { %319 = vrot.lane.b32.xlu1 %v1626_v18, %s1748_s28 }
 0x546   :  { %v320_v19 = vpop.permute.xlu1 %319 }
 0x547   :  { %v322_v20 = vmul.f32 %v320_v19, %v304_v11 }
 0x549   :  { %v340_v21 = vrot.slane %v322_v20, %v1843_v46 }
 0x54b   :  { %341 = vrot.lane.b32.xlu0 %v340_v21, %s1749_s29 }
 0x5bd   :  { %v342_v22 = vpop.permute.xlu0 %341 }
 0x5be   :  { %1449 = vmatmul.mubr.msk.f32.vlgmr.msra.gmra.mrb[2].mxu0 %vm81_vm1, %v342_v22 }
 0x5bf   :  { %1561 = vmatpush3.bf16.msra.mxu0 %v1803_v4  ;;  %1470 = vmatprep.mubr.msk.f32.mxu0 %vm1745_vm0, %v1746_v6 }
 0x5c0   :  { %1562 = vmatprep.subr.bf16.mxu0 %v1744_v3 }
 0x5c3   :  { %1564 = vmatpush3.bf16.msra.mxu0 %v1811_v7 }
 0x5c4   :  { %1571 = vmatprep.subr.bf16.mxu0 %v1744_v3 }
 0x691   :  { %v411_v30 = vpop.f32.mrb[2].mxu0 }
 0x692   :  { %v415_v31 = vadd.f32 %v411_v30, %v335_v29  ;;  %v1450_v32 = vpop.f32.mrb[3].mxu0  ;;  %v575_v29 = vstv %s569_s23  ;;  %v574_v30 = vadd.f32 %v573_v27, %v571_v28  ;;  %v814_v27 = vstv %s809_s8 }
 0x693   :  { %v815_v28 = vmul.f32 %v814_v27, %v1830_v9 }
 0x694   :  { %1627 = vtanh.f32 %v415_v31  ;;  %v1336_v34 = vclamps-f32 %v415_v31, 30.0  ;;  %v576_v31 = vmul.f32 %v575_v29, %v1833_v12  ;;  %v813_v29 = vld [vmem:[%s812_s10] sm:$0x1] }
 0x696   :  { %v418_v35 = vsub.f32 0.0, %v1336_v34  ;;  %v577_v32 = vadd.f32 %v576_v31, %v574_v30  ;;  %v817_v30 = vstv %s811_s9  ;;  %v816_v31 = vadd.f32 %v815_v28, %v813_v29  ;;  %v1054_v28 = vld [vmem:[#allocation6 + $0x40] sm:$0xff]  ;;  %v1055_v29 = vld [vmem:[#allocation6 + $0x48] sm:$0xff] }
 0x698   :  { %v419_v36 = vmul.f32 1.442695, %v418_v35 }
 0x69a   :  { %1629 = vpow2.f32 %v419_v36 }
 0x69e   :  { %v1628_v33 = vpop.eup %1627 }
 0x69f   :  { %429 = vrot.lane.b32.xlu1 %v1628_v33, %s1748_s28 }
 0x6a4   :  { %v1630_v37 = vpop.eup %1629 }
 0x6a5   :  { %v421_v38 = vadd.f32 1.0, %v1630_v37 }
 0x6a7   :  { %1631 = vrcp.f32 %v421_v38 }
 0x6b1   :  { %v1632_v39 = vpop.eup %1631 }
 0x6b2   :  { %v423_v40 = vmul.f32 %v1632_v39, %v421_v38 }
 0x6b4   :  { %v424_v41 = vsub.f32 2.0, %v423_v40 }
 0x6b6   :  { %v425_v42 = vmul.f32 %v1632_v39, %v424_v41 }
 0x6b8   :  { %v427_v45 = vmul.f32 %v425_v42, %v316_v17 }
 0x711   :  { %v430_v43 = vpop.permute.xlu1 %429 }
 0x712   :  { %v432_v44 = vmul.f32 %v430_v43, %v425_v42 }
 0x714   :  { %434 = vrot.lane.b32.xlu0 %v432_v44, %s1749_s29 }
 0x786   :  { %v435_v47 = vpop.permute.xlu0 %434 }
 0x787   :  { %v437_v48 = vadd.f32 %v435_v47, %v427_v45 }
 0x789   :  { %1633 = vtanh.f32 %v437_v48 }
 0x793   :  { %v1634_v49 = vpop.eup %1633 }
 0x794   :  { %440 = vrot.lane.b32.xlu1 %v1634_v49, %s1748_s28 }
 0x806   :  { %v441_v50 = vpop.permute.xlu1 %440 }
 0x807   :  { %v443_v51 = vmul.f32 %v441_v50, %v425_v42 }
 0x809   :  { %v461_v52 = vrot.slane %v443_v51, %v1843_v46 }
 0x80b   :  { %462 = vrot.lane.b32.xlu0 %v461_v52, %s1749_s29 }
 0x87d   :  { %v463_v53 = vpop.permute.xlu0 %462 }
 0x87e   :  { %1460 = vmatmul.mubr.msk.f32.vlgmr.msra.gmra.mrb[2].mxu1 %vm81_vm1, %v463_v53 }
 0x87f   :  { %1567 = vmatpush3.bf16.msra.mxu1 %v1803_v4  ;;  %1481 = vmatprep.mubr.msk.f32.mxu1 %vm1745_vm0, %v1746_v6 }
 0x880   :  { %1568 = vmatprep.subr.bf16.mxu1 %v1744_v3 }
 0x883   :  { %1570 = vmatpush3.bf16.msra.mxu1 %v1811_v7 }
 0x884   :  { %1577 = vmatprep.subr.bf16.mxu1 %v1744_v3 }
 0x951   :  { %v532_v61 = vpop.f32.mrb[2].mxu1 }
 0x952   :  { %v536_v62 = vadd.f32 %v532_v61, %v456_v60  ;;  %v1461_v63 = vpop.f32.mrb[3].mxu1  ;;  %v695_v60 = vadd.f32 %v694_v58, %v692_v59  ;;  %v935_v58 = vstv %s930_s14 }
 0x953   :  { %v936_v59 = vmul.f32 %v935_v58, %v1830_v9 }
 0x954   :  { %1635 = vtanh.f32 %v536_v62  ;;  %v1341_v1 = vclamps-f32 %v536_v62, 30.0 }
 0x956   :  { %v539_v2 = vsub.f32 0.0, %v1341_v1 }
 0x958   :  { %v540_v5 = vmul.f32 1.442695, %v539_v2 }
 0x95a   :  { %1637 = vpow2.f32 %v540_v5 }
 0x95e   :  { %v1636_v0 = vpop.eup %1635 }
 0x95f   :  { %550 = vrot.lane.b32.xlu1 %v1636_v0, %s1748_s28 }
 0x964   :  { %v1638_v8 = vpop.eup %1637 }
 0x965   :  { %v542_v10 = vadd.f32 1.0, %v1638_v8 }
 0x967   :  { %1639 = vrcp.f32 %v542_v10 }
 0x971   :  { %v1640_v11 = vpop.eup %1639 }
 0x972   :  { %v544_v13 = vmul.f32 %v1640_v11, %v542_v10 }
 0x974   :  { %v545_v14 = vsub.f32 2.0, %v544_v13 }
 0x976   :  { %v546_v15 = vmul.f32 %v1640_v11, %v545_v14 }
 0x978   :  { %v548_v18 = vmul.f32 %v546_v15, %v437_v48 }
 0x9d1   :  { %v551_v16 = vpop.permute.xlu1 %550 }
 0x9d2   :  { %v553_v17 = vmul.f32 %v551_v16, %v546_v15 }
 0x9d4   :  { %555 = vrot.lane.b32.xlu0 %v553_v17, %s1749_s29 }
 0xa46   :  { %v556_v19 = vpop.permute.xlu0 %555 }
 0xa47   :  { %v558_v20 = vadd.f32 %v556_v19, %v548_v18 }
 0xa49   :  { %1641 = vtanh.f32 %v558_v20 }
 0xa53   :  { %v1642_v21 = vpop.eup %1641 }
 0xa54   :  { %561 = vrot.lane.b32.xlu1 %v1642_v21, %s1748_s28 }
 0xac6   :  { %v562_v22 = vpop.permute.xlu1 %561 }
 0xac7   :  { %v564_v23 = vmul.f32 %v562_v22, %v546_v15 }
 0xac9   :  { %v582_v24 = vrot.slane %v564_v23, %v1843_v46 }
 0xacb   :  { %583 = vrot.lane.b32.xlu0 %v582_v24, %s1749_s29 }
 0xb3d   :  { %v584_v25 = vpop.permute.xlu0 %583 }
 0xb3e   :  { %1471 = vmatmul.mubr.msk.f32.vlgmr.msra.gmra.mrb[4].mxu0 %vm81_vm1, %v584_v25 }
 0xb3f   :  { %1573 = vmatpush3.bf16.msra.mxu0 %v1803_v4  ;;  %1492 = vmatprep.mubr.msk.f32.mxu0 %vm1745_vm0, %v1746_v6 }
 0xb40   :  { %1574 = vmatprep.subr.bf16.mxu0 %v1744_v3 }
 0xb43   :  { %1576 = vmatpush3.bf16.msra.mxu0 %v1811_v7 }
 0xb44   :  { %1583 = vmatprep.subr.bf16.mxu0 %v1744_v3 }
 0xc11   :  { %v653_v33 = vpop.f32.mrb[4].mxu0 }
 0xc12   :  { %v657_v34 = vadd.f32 %v653_v33, %v577_v32  ;;  %v1472_v35 = vpop.f32.mrb[5].mxu0  ;;  %v818_v32 = vmul.f32 %v817_v30, %v1833_v12  ;;  %v1590_v30 = vpack.c.bf16 %v1055_v29, %v1054_v28 }
 0xc14   :  { %1643 = vtanh.f32 %v657_v34  ;;  %v1346_v37 = vclamps-f32 %v657_v34, 30.0  ;;  %v819_v33 = vadd.f32 %v818_v32, %v816_v31 }
 0xc16   :  { %v660_v38 = vsub.f32 0.0, %v1346_v37 }
 0xc18   :  { %v661_v39 = vmul.f32 1.442695, %v660_v38 }
 0xc1a   :  { %1645 = vpow2.f32 %v661_v39 }
 0xc1e   :  { %v1644_v36 = vpop.eup %1643 }
 0xc1f   :  { %671 = vrot.lane.b32.xlu1 %v1644_v36, %s1748_s28 }
 0xc24   :  { %v1646_v40 = vpop.eup %1645 }
 0xc25   :  { %v663_v41 = vadd.f32 1.0, %v1646_v40 }
 0xc27   :  { %1647 = vrcp.f32 %v663_v41 }
 0xc31   :  { %v1648_v42 = vpop.eup %1647 }
 0xc32   :  { %v665_v43 = vmul.f32 %v1648_v42, %v663_v41 }
 0xc34   :  { %v666_v44 = vsub.f32 2.0, %v665_v43 }
 0xc36   :  { %v667_v45 = vmul.f32 %v1648_v42, %v666_v44 }
 0xc38   :  { %v669_v49 = vmul.f32 %v667_v45, %v558_v20 }
 0xc91   :  { %v672_v47 = vpop.permute.xlu1 %671 }
 0xc92   :  { %v674_v48 = vmul.f32 %v672_v47, %v667_v45 }
 0xc94   :  { %676 = vrot.lane.b32.xlu0 %v674_v48, %s1749_s29 }
 0xd06   :  { %v677_v50 = vpop.permute.xlu0 %676 }
 0xd07   :  { %v679_v51 = vadd.f32 %v677_v50, %v669_v49 }
 0xd09   :  { %1649 = vtanh.f32 %v679_v51 }
 0xd13   :  { %v1650_v52 = vpop.eup %1649 }
 0xd14   :  { %682 = vrot.lane.b32.xlu1 %v1650_v52, %s1748_s28 }
 0xd86   :  { %v683_v53 = vpop.permute.xlu1 %682 }
 0xd87   :  { %v685_v54 = vmul.f32 %v683_v53, %v667_v45 }
 0xd89   :  { %v703_v55 = vrot.slane %v685_v54, %v1843_v46 }
 0xd8b   :  { %704 = vrot.lane.b32.xlu0 %v703_v55, %s1749_s29 }
 0xdfd   :  { %v705_v56 = vpop.permute.xlu0 %704 }
 0xdfe   :  { %1482 = vmatmul.mubr.msk.f32.vlgmr.msra.gmra.mrb[4].mxu1 %vm81_vm1, %v705_v56 }
 0xdff   :  { %1579 = vmatpush3.bf16.msra.mxu1 %v1803_v4  ;;  %1503 = vmatprep.mubr.msk.f32.mxu1 %vm1745_vm0, %v1746_v6  ;;  %v696_v4 = vstv %s690_s3 }
 0xe00   :  { %1580 = vmatprep.subr.bf16.mxu1 %v1744_v3  ;;  %v697_v61 = vmul.f32 %v696_v4, %v1833_v12  ;;  %v934_v4 = vld [vmem:[%s933_s16] sm:$0x1] }
 0xe02   :  { %v698_v62 = vadd.f32 %v697_v61, %v695_v60  ;;  %v938_v60 = vstv %s932_s15  ;;  %v937_v61 = vadd.f32 %v936_v59, %v934_v4 }
 0xe03   :  { %1582 = vmatpush3.bf16.msra.mxu1 %v1811_v7 }
 0xe04   :  { %1589 = vmatprep.subr.bf16.mxu1 %v1744_v3 }
 0xed1   :  { %v774_v63 = vpop.f32.mrb[4].mxu1 }
 0xed2   :  { %v778_v0 = vadd.f32 %v774_v63, %v698_v62  ;;  %v1483_v7 = vpop.f32.mrb[5].mxu1  ;;  %v939_v62 = vmul.f32 %v938_v60, %v1833_v12 }
 0xed4   :  { %1651 = vtanh.f32 %v778_v0  ;;  %v1351_v2 = vclamps-f32 %v778_v0, 30.0  ;;  %v940_v63 = vadd.f32 %v939_v62, %v937_v61 }
 0xed6   :  { %v781_v5 = vsub.f32 0.0, %v1351_v2 }
 0xed8   :  { %v782_v8 = vmul.f32 1.442695, %v781_v5 }
 0xeda   :  { %1653 = vpow2.f32 %v782_v8 }
 0xede   :  { %v1652_v1 = vpop.eup %1651 }
 0xedf   :  { %792 = vrot.lane.b32.xlu1 %v1652_v1, %s1748_s28 }
 0xee4   :  { %v1654_v10 = vpop.eup %1653 }
 0xee5   :  { %v784_v11 = vadd.f32 1.0, %v1654_v10 }
 0xee7   :  { %1655 = vrcp.f32 %v784_v11 }
 0xef1   :  { %v1656_v13 = vpop.eup %1655 }
 0xef2   :  { %v786_v14 = vmul.f32 %v1656_v13, %v784_v11 }
 0xef4   :  { %v787_v15 = vsub.f32 2.0, %v786_v14 }
 0xef6   :  { %v788_v16 = vmul.f32 %v1656_v13, %v787_v15 }
 0xef8   :  { %v790_v19 = vmul.f32 %v788_v16, %v679_v51 }
 0xf51   :  { %v793_v17 = vpop.permute.xlu1 %792 }
 0xf52   :  { %v795_v18 = vmul.f32 %v793_v17, %v788_v16 }
 0xf54   :  { %797 = vrot.lane.b32.xlu0 %v795_v18, %s1749_s29 }
 0xfc6   :  { %v798_v20 = vpop.permute.xlu0 %797 }
 0xfc7   :  { %v800_v21 = vadd.f32 %v798_v20, %v790_v19 }
 0xfc9   :  { %1657 = vtanh.f32 %v800_v21 }
 0xfd3   :  { %v1658_v22 = vpop.eup %1657 }
 0xfd4   :  { %803 = vrot.lane.b32.xlu1 %v1658_v22, %s1748_s28  ;;  %v1051_v22 = vld [vmem:[#allocation6 + $0x28] sm:$0xff] }
0x1046   :  { %v804_v23 = vpop.permute.xlu1 %803 }
0x1047   :  { %v806_v24 = vmul.f32 %v804_v23, %v788_v16  ;;  %v1052_v23 = vld [vmem:[#allocation6 + $0x30] sm:$0xff] }
0x1049   :  { %v824_v25 = vrot.slane %v806_v24, %v1843_v46 }
0x104b   :  { %825 = vrot.lane.b32.xlu0 %v824_v25, %s1749_s29  ;;  %v1053_v25 = vld [vmem:[#allocation6 + $0x38] sm:$0xff] }
0x10bd   :  { %v826_v26 = vpop.permute.xlu0 %825 }
0x10be   :  { %1493 = vmatmul.mubr.msk.f32.vlgmr.msra.gmra.mrb[6].mxu0 %vm81_vm1, %v826_v26  ;;  %v1587_v26 = vpack.c.bf16 %v1053_v25, %v1052_v23 }
0x10bf   :  { %1514 = vmatprep.mubr.msk.f32.mxu0 %vm1745_vm0, %v1746_v6 }
0x1191   :  { %v895_v34 = vpop.f32.mrb[6].mxu0 }
0x1192   :  { %v899_v35 = vadd.f32 %v895_v34, %v819_v33  ;;  %v1494_v36 = vpop.f32.mrb[7].mxu0 }
0x1194   :  { %1659 = vtanh.f32 %v899_v35  ;;  %v1356_v38 = vclamps-f32 %v899_v35, 30.0 }
0x1196   :  { %v902_v39 = vsub.f32 0.0, %v1356_v38  ;;  %v1057_v38 = vld [vmem:[#allocation6 + $0x58] sm:$0xff] }
0x1198   :  { %v903_v40 = vmul.f32 1.442695, %v902_v39  ;;  %v1060_v39 = vld [vmem:[#allocation6 + $0x70] sm:$0x1] }
0x119a   :  { %1661 = vpow2.f32 %v903_v40 }
0x119e   :  { %v1660_v37 = vpop.eup %1659 }
0x119f   :  { %913 = vrot.lane.b32.xlu1 %v1660_v37, %s1748_s28  ;;  %v1056_v37 = vld [vmem:[#allocation6 + $0x50] sm:$0xff] }
0x11a4   :  { %v1662_v41 = vpop.eup %1661 }
0x11a5   :  { %v905_v42 = vadd.f32 1.0, %v1662_v41 }
0x11a7   :  { %1663 = vrcp.f32 %v905_v42 }
0x11b1   :  { %v1664_v43 = vpop.eup %1663 }
0x11b2   :  { %v907_v44 = vmul.f32 %v1664_v43, %v905_v42 }
0x11b4   :  { %v908_v45 = vsub.f32 2.0, %v907_v44  ;;  %v1059_v44 = vld [vmem:[#allocation6 + $0x68] sm:$0xff] }
0x11b6   :  { %v909_v47 = vmul.f32 %v1664_v43, %v908_v45 }
0x11b8   :  { %v911_v50 = vmul.f32 %v909_v47, %v800_v21  ;;  %v1050_v21 = vld [vmem:[#allocation6 + $0x20] sm:$0xff] }
0x11b9   :  { %v1584_v24 = vpack.c.bf16 %v1051_v22, %v1050_v21 }
0x11bb   :  { %1585 = vmatpush3.bf16.msra.mxu0 %v1584_v24 }
0x11bc   :  { %1586 = vmatprep.subr.bf16.mxu0 %v1744_v3 }
0x11bf   :  { %1588 = vmatpush3.bf16.msra.mxu0 %v1587_v26 }
0x11c0   :  { %1595 = vmatprep.subr.bf16.mxu0 %v1744_v3 }
0x1211   :  { %v914_v48 = vpop.permute.xlu1 %913 }
0x1212   :  { %v916_v49 = vmul.f32 %v914_v48, %v909_v47 }
0x1214   :  { %918 = vrot.lane.b32.xlu0 %v916_v49, %s1749_s29 }
0x1286   :  { %v919_v51 = vpop.permute.xlu0 %918 }
0x1287   :  { %v921_v52 = vadd.f32 %v919_v51, %v911_v50  ;;  %v1062_v51 = vld [vmem:[#allocation6 + $0x72] sm:$0x1] }
0x1289   :  { %1665 = vtanh.f32 %v921_v52 }
0x1293   :  { %v1666_v53 = vpop.eup %1665 }
0x1294   :  { %924 = vrot.lane.b32.xlu1 %v1666_v53, %s1748_s28 }
0x1306   :  { %v925_v54 = vpop.permute.xlu1 %924 }
0x1307   :  { %v927_v55 = vmul.f32 %v925_v54, %v909_v47  ;;  %v1061_v47 = vld [vmem:[#allocation6 + $0x71] sm:$0x1] }
0x1309   :  { %v945_v56 = vrot.slane %v927_v55, %v1843_v46 }
0x130b   :  { %946 = vrot.lane.b32.xlu0 %v945_v56, %s1749_s29 }
0x137d   :  { %v947_v57 = vpop.permute.xlu0 %946 }
0x137e   :  { %1504 = vmatmul.mubr.msk.f32.vlgmr.msra.gmra.mrb[6].mxu1 %vm81_vm1, %v947_v57 }
0x137f   :  { %1525 = vmatprep.mubr.msk.f32.mxu1 %vm1745_vm0, %v1746_v6  ;;  %1591 = vmatpush3.bf16.msra.mxu1 %v1590_v30 }
0x1380   :  { %1592 = vmatprep.subr.bf16.mxu1 %v1744_v3  ;;  %v1593_v3 = vpack.c.bf16 %v1057_v38, %v1056_v37 }
0x1383   :  { %1594 = vmatpush3.bf16.msra.mxu1 %v1593_v3 }
0x1451   :  { %v1016_v0 = vpop.f32.mrb[6].mxu1 }
0x1452   :  { %v1020_v7 = vadd.f32 %v1016_v0, %v940_v63  ;;  %v1505_v1 = vpop.f32.mrb[7].mxu1 }
0x1454   :  { %1667 = vtanh.f32 %v1020_v7  ;;  %v1361_v5 = vclamps-f32 %v1020_v7, 30.0 }
0x1456   :  { %v1023_v8 = vsub.f32 0.0, %v1361_v5 }
0x1458   :  { %v1024_v10 = vmul.f32 1.442695, %v1023_v8 }
0x145a   :  { %1669 = vpow2.f32 %v1024_v10 }
0x145e   :  { %v1668_v2 = vpop.eup %1667 }
0x145f   :  { %1034 = vrot.lane.b32.xlu1 %v1668_v2, %s1748_s28 }
0x1464   :  { %v1670_v11 = vpop.eup %1669 }
0x1465   :  { %v1026_v9 = vadd.f32 1.0, %v1670_v11 }
0x1467   :  { %1671 = vrcp.f32 %v1026_v9 }
0x1471   :  { %v1672_v13 = vpop.eup %1671 }
0x1472   :  { %v1028_v14 = vmul.f32 %v1672_v13, %v1026_v9 }
0x1474   :  { %v1029_v15 = vsub.f32 2.0, %v1028_v14 }
0x1476   :  { %v1030_v16 = vmul.f32 %v1672_v13, %v1029_v15 }
0x1478   :  { %v1032_v18 = vmul.f32 %v1030_v16, %v921_v52 }
0x14d1   :  { %v1035_v12 = vpop.permute.xlu1 %1034 }
0x14d2   :  { %v1037_v17 = vmul.f32 %v1035_v12, %v1030_v16 }
0x14d4   :  { %1039 = vrot.lane.b32.xlu0 %v1037_v17, %s1749_s29 }
0x1546   :  { %v1040_v19 = vpop.permute.xlu0 %1039 }
0x1547   :  { %v1042_v20 = vadd.f32 %v1040_v19, %v1032_v18 }
0x1549   :  { %1673 = vtanh.f32 %v1042_v20 }
0x1553   :  { %v1674_v27 = vpop.eup %1673 }
0x1554   :  { %1045 = vrot.lane.b32.xlu1 %v1674_v27, %s1748_s28 }
0x15c6   :  { %v1046_v31 = vpop.permute.xlu1 %1045 }
0x15c7   :  { %v1048_v32 = vmul.f32 %v1046_v31, %v1030_v16 }
0x15c9   :  { %v1049_v33 = vmax.f32 %v1048_v32, 0.0  ;;  %v1295_v34 = vrot.slane %v1048_v32, %v1843_v46 }
0x15cb   :  { %1296 = vrot.lane.b32.xlu1 %v1295_v34, %s1749_s29  ;;  %v1067_v35 = vrot.slane %v1049_v33, %v1843_v46  ;;  %v1058_v46 = vld [vmem:[#allocation6 + $0x60] sm:$0xff] }
0x15cc   :  { %v1596_v45 = vpack.c.bf16 %v1059_v44, %v1058_v46 }
0x15cd   :  { %1068 = vrot.lane.b32.xlu0 %v1067_v35, %s1749_s29 }
0x163d   :  { %v1297_v55 = vpop.permute.xlu1 %1296 }
0x163e   :  { %v1303_v56 = vsel %vm81_vm1, %v1297_v55, %v1042_v20 }
0x163f   :  { %v1069_v36 = vpop.permute.xlu0 %1068 }
0x1640   :  { %1515 = vmatmul.mubr.msk.f32.vlgmr.msra.gmra.mrb[8].mxu0 %vm81_vm1, %v1069_v36 }
0x1641   :  { %1532 = vmatprep.mubr.msk.f32.mxu0 %vm1745_vm0, %v1746_v6  ;;  %1597 = vmatpush3.bf16.msra.mxu0 %v1596_v45 }
0x1713   :  { %v1138_v40 = vpop.f32.mrb[8].mxu0 }
0x1714   :  { %v1139_v41 = vadd.f32 %v1138_v40, %v1060_v39  ;;  %v1516_v42 = vpop.f32.mrb[9].mxu0 }
0x1716   :  { %v1142_v43 = vmax.f32 %v1139_v41, 0.0 }
0x1718   :  { %1526 = vmatmul.mubr.msk.f32.vlgmr.msra.gmra.mrb[8].mxu1 %vm81_vm1, %v1142_v43 }
0x17eb   :  { %v1212_v48 = vpop.f32.mrb[8].mxu1 }
0x17ec   :  { %v1213_v49 = vadd.f32 %v1212_v48, %v1061_v47  ;;  %v1527_v50 = vpop.f32.mrb[9].mxu1 }
0x17ee   :  { %v1216_v6 = vmax.f32 %v1213_v49, 0.0 }
0x17f0   :  { %1533 = vmatmul.mubr.msk.f32.vlgmr.msra.gmra.mrb[10].mxu0 %vm1217_vm2, %v1216_v6 }
0x18c3   :  { %v1287_v52 = vpop.f32.mrb[10].mxu0 }
0x18c4   :  { %v1288_v53 = vadd.f32 %v1287_v52, %v1062_v51  ;;  %v1534_v54 = vpop.f32.mrb[11].mxu0 }
0x18c6   :  { %1300 = vrot.lane.b32.xlu0 %v1288_v53, %s1748_s28 }
0x1938   :  { %v1301_v57 = vpop.permute.xlu0 %1300 }
0x1939   :  { %v1305_v58 = vsel %vm1304_vm3, %v1303_v56, %v1301_v57 }
0x193a   :  { %1306 = vst [vmem:[%s1955_s4] sm:$0x1] %v1305_v58 }
0x193b   :  { %1311 = vsyncpa [#allocation3], 1 }
0x193c   :  { %1312 = vsyncpa [#allocation7], 1 }
0x193d   :  { %1313 = vsyncpa [#allocation4], 1 }

</bundles_post_ra>
